<compile_context>
chip_gen: v5e
topology: v5e:2x2
jax: 0.10.0
libtpu: 0.0.40
codegen_flags: <defaults>
</compile_context>

<pallas_src>
import functools

import jax
import jax.numpy as jnp
from jax import lax
from jax.experimental import pallas as pl

LANE = 128  # TPU lane width: pixel axes are padded to a multiple of this.

# Matmul-operand dtype.  Kept f32 for numerical parity with the f32 PyTorch
# reference (these layers are launch-overhead bound, not MXU bound).  On
# v6e/v7x this can be flipped to jnp.bfloat16 to halve A/B operand traffic and
# use the bf16-native MXU (~1e-2 relative deviation); accumulation and the
# bias/ReLU epilogue stay f32 either way.
MXU_DTYPE = jnp.float32


def _round_up(x, m):
    return ((x + m - 1) // m) * m


# ----------------------------------------------------------------------------
# Pallas kernels (all grid-less, whole-array blocks in VMEM)
# ----------------------------------------------------------------------------
def _conv_bias_act_kernel(w_ref, p_ref, b_ref, o_ref, *, relu):
    """o = maybe_relu(W @ P + b).  W:(Cout,K)  P:(K,Pix)  b:(Cout,1)  o:(Cout,Pix)."""
    acc = jnp.dot(w_ref[...], p_ref[...], preferred_element_type=jnp.float32)
    acc = acc + b_ref[...]
    if relu:
        acc = jnp.maximum(acc, 0.0)
    o_ref[...] = acc


def _conv_relu_pool_kernel(w_ref, p_ref, b_ref, o_ref, *, n_pool):
    """Fused Conv2d + bias + ReLU + AvgPool2d.

    p_ref: (n_pool, K, Qp) -- one im2col slab per pool offset, pixel axis
    (lane) padded to a multiple of 128.  The average pool is the mean of the
    n_pool post-ReLU matmul results (identical output pixel ordering).
    """
    w = w_ref[...]
    b = b_ref[...]
    acc = jnp.maximum(
        jnp.dot(w, p_ref[0], preferred_element_type=jnp.float32) + b, 0.0)
    for g in range(1, n_pool):
        acc = acc + jnp.maximum(
            jnp.dot(w, p_ref[g], preferred_element_type=jnp.float32) + b, 0.0)
    o_ref[...] = acc * (1.0 / n_pool)


def _mlp_kernel(x_ref, w0, b0, w1, b1, w2, b2, w3, b3, w4, b4, w5, b5, o_ref):
    """All six Linear layers fused into one kernel; all weights VMEM-resident."""
    def lin(h, w_r, b_r, relu):
        y = jnp.dot(h, w_r[...], preferred_element_type=jnp.float32) + b_r[...]
        return jnp.maximum(y, 0.0) if relu else y

    h = x_ref[...]
    h = lin(h, w0, b0, True)     # encoder lin 0 + ReLU
    h = lin(h, w1, b1, True)     # encoder lin 1 + ReLU
    h = lin(h, w2, b2, False)    # encoder lin 2 -> latent (no activation)
    h = lin(h, w3, b3, True)     # decoder lin 0 + ReLU
    h = lin(h, w4, b4, True)     # decoder lin 1 + ReLU
    o_ref[...] = lin(h, w5, b5, True)   # decoder lin 2 + ReLU


def _adaptive_pool_kernel(x_ref, mh_ref, mwt_ref, o_ref, *, nc):
    """AdaptiveAvgPool2d as  Mh @ x[n] @ Mw^T  per (n, c) plane (nc tiny, static)."""
    mh = mh_ref[...]
    mwt = mwt_ref[...]
    for n in range(nc):
        t = jnp.dot(mh, x_ref[n], preferred_element_type=jnp.float32)
        o_ref[n] = jnp.dot(t, mwt, preferred_element_type=jnp.float32)


# ----------------------------------------------------------------------------
# Layer wrappers (host glue: static slices only, no gathers, no M padding)
# ----------------------------------------------------------------------------
def _fused_conv_relu_pool(act, w, b, pool_k):
    """act: (Cin, N, H, W) f32; w: (Cout, Cin, kh, kw) -> (Cout, N, Hp, Wp)."""
    cin, n, hgt, wid = act.shape
    cout, _, kh, kw = w.shape
    ho, wo = hgt - kh + 1, wid - kw + 1
    hp, wp = ho // pool_k, wo // pool_k          # floor-mode AvgPool2d
    q = n * hp * wp
    qp = _round_up(q, LANE)

    groups = []
    for py in range(pool_k):
        for px in range(pool_k):
            cols = []
            for dy in range(kh):
                for dx in range(kw):
                    sl = lax.slice(
                        act,
                        (0, 0, py + dy, px + dx),
                        (cin, n,
                         py + dy + pool_k * (hp - 1) + 1,
                         px + dx + pool_k * (wp - 1) + 1),
                        (1, 1, pool_k, pool_k))               # (Cin, N, Hp, Wp)
                    cols.append(sl)
            g = jnp.stack(cols, axis=1).reshape(cin * kh * kw, q)
            if qp > q:
                g = jnp.pad(g, ((0, 0), (0, qp - q)))
            groups.append(g)
    patches = jnp.stack(groups, axis=0).astype(MXU_DTYPE)     # (n_pool, K, Qp)

    w2d = w.reshape(cout, cin * kh * kw).astype(MXU_DTYPE)
    b2d = b.reshape(cout, 1).astype(jnp.float32)
    out = pl.pallas_call(
        functools.partial(_conv_relu_pool_kernel, n_pool=pool_k * pool_k),
        out_shape=jax.ShapeDtypeStruct((cout, qp), jnp.float32),
    )(w2d, patches, b2d)
    return out[:, :q].reshape(cout, n, hp, wp)


def _conv2d_cnhw(act, w, b, relu):
    """Valid conv, stride 1.  act: (Cin, N, H, W); w: (Cout, Cin, kh, kw)."""
    cin, n, hgt, wid = act.shape
    cout, _, kh, kw = w.shape
    ho, wo = hgt - kh + 1, wid - kw + 1
    p = n * ho * wo
    pp = _round_up(p, LANE)

    cols = []
    for dy in range(kh):
        for dx in range(kw):
            cols.append(lax.slice(act, (0, 0, dy, dx), (cin, n, dy + ho, dx + wo)))
    patches = jnp.stack(cols, axis=1).reshape(cin * kh * kw, p)
    if pp > p:
        patches = jnp.pad(patches, ((0, 0), (0, pp - p)))
    patches = patches.astype(MXU_DTYPE)

    w2d = w.reshape(cout, cin * kh * kw).astype(MXU_DTYPE)
    b2d = b.reshape(cout, 1).astype(jnp.float32)
    out = pl.pallas_call(
        functools.partial(_conv_bias_act_kernel, relu=relu),
        out_shape=jax.ShapeDtypeStruct((cout, pp), jnp.float32),
    )(w2d, patches, b2d)
    return out[:, :p].reshape(cout, n, ho, wo)


def _conv_transpose2d_cnhw(act, w, b, stride, relu):
    """PyTorch ConvTranspose2d.  act: (Cin, N, H, W); w: (Cin, Cout, kh, kw)."""
    _, cout, kh, kw = w.shape
    # Zero-dilate by `stride` and pad by (k-1) in a single lax.pad (no scatter).
    act_d = lax.pad(act, jnp.asarray(0.0, act.dtype),
                    ((0, 0, 0), (0, 0, 0),
                     (kh - 1, kh - 1, stride - 1),
                     (kw - 1, kw - 1, stride - 1)))
    w_conv = jnp.flip(w, axis=(2, 3)).transpose(1, 0, 2, 3)   # (Cout, Cin, kh, kw)
    return _conv2d_cnhw(act_d, w_conv, b, relu)


def _fused_mlp(x, params):
    """Runs all six Linear layers (enc lin0..2, dec lin0..2) in one kernel."""
    names = ["enc_lin0", "enc_lin1", "enc_lin2", "dec_lin0", "dec_lin1", "dec_lin2"]
    args = [x.astype(jnp.float32)]
    for nm in names:
        args.append(params[nm + "_w"].T.astype(jnp.float32))          # (in, out)
        args.append(params[nm + "_b"].reshape(1, -1).astype(jnp.float32))
    out_dim = params["dec_lin2_w"].shape[0]
    return pl.pallas_call(
        _mlp_kernel,
        out_shape=jax.ShapeDtypeStruct((x.shape[0], out_dim), jnp.float32),
    )(*args)


def _adaptive_matrix(in_size, out_size):
    i = jnp.arange(out_size)
    starts = (i * in_size) // out_size
    ends = ((i + 1) * in_size + out_size - 1) // out_size              # ceil
    j = jnp.arange(in_size)
    mask = (j[None, :] >= starts[:, None]) & (j[None, :] < ends[:, None])
    return mask.astype(jnp.float32) / (ends - starts)[:, None].astype(jnp.float32)


def adaptive_avg_pool2d(x, out_hw):
    """PyTorch AdaptiveAvgPool2d.  x: (N, C, H, W) -> (N, C, Hout, Wout)."""
    n, c, hgt, wid = x.shape
    hout, wout = out_hw
    mh = _adaptive_matrix(hgt, hout)          # (Hout, H)
    mwt = _adaptive_matrix(wid, wout).T       # (W, Wout)
    xr = x.reshape(n * c, hgt, wid).astype(jnp.float32)
    out = pl.pallas_call(
        functools.partial(_adaptive_pool_kernel, nc=n * c),
        out_shape=jax.ShapeDtypeStruct((n * c, hout, wout), jnp.float32),
    )(xr, mh, mwt)
    return out.reshape(n, c, hout, wout)


# ----------------------------------------------------------------------------
# AE model (small, deterministic instantiation of the PyTorch module)
# ----------------------------------------------------------------------------
CFG = dict(
    image_shape=(36, 44),
    conv_kernel=3,
    pool_k=2,
    conv_filters=[8, 8, 4],
    lin_num_neurons=[32, 16],
    latent_dim=2,
    deconv_filters=[8, 8],
    deconv_kernel=3,
    deconv_stride=2,
)


def _conv_output_shape(cfg):
    hgt, wid = cfg["image_shape"]
    k, p = cfg["conv_kernel"], cfg["pool_k"]
    for _ in range(3):
        hgt = (hgt - k + 1) // p
        wid = (wid - k + 1) // p
    return (cfg["conv_filters"][-1], hgt, wid)


def init_params(key, cfg):
    k = cfg["conv_kernel"]
    kd = cfg["deconv_kernel"]
    f = cfg["conv_filters"]
    df = cfg["deconv_filters"]
    n = cfg["lin_num_neurons"]
    latent = cfg["latent_dim"]
    conv_out = _conv_output_shape(cfg)
    lin_in = conv_out[0] * conv_out[1] * conv_out[2]

    spec = [
        # Encoder convs: (name, weight_shape, bias_shape, fan_in)
        ("enc_conv0", (f[0], 1, k, k), (f[0],), 1 * k * k),
        ("enc_conv1", (f[1], f[0], k, k), (f[1],), f[0] * k * k),
        ("enc_conv2", (f[2], f[1], k, k), (f[2],), f[1] * k * k),
        # Encoder linears
        ("enc_lin0", (n[0], lin_in), (n[0],), lin_in),
        ("enc_lin1", (n[1], n[0]), (n[1],), n[0]),
        ("enc_lin2", (latent, n[1]), (latent,), n[1]),
        # Decoder linears (neurons reversed)
        ("dec_lin0", (n[1], latent), (n[1],), latent),
        ("dec_lin1", (n[0], n[1]), (n[0],), n[1]),
        ("dec_lin2", (lin_in, n[0]), (lin_in,), n[0]),
        # Decoder deconvs: ConvTranspose2d weight is (Cin, Cout, kh, kw)
        ("dec_deconv0", (conv_out[0], df[0], kd, kd), (df[0],), conv_out[0] * kd * kd),
        ("dec_deconv1", (df[0], df[1], kd, kd), (df[1],), df[0] * kd * kd),
        ("dec_deconv2", (df[1], 1, kd, kd), (1,), df[1] * kd * kd),
    ]
    params = {}
    keys = jax.random.split(key, 2 * len(spec))
    for idx, (name, wshape, bshape, fan_in) in enumerate(spec):
        bound = 1.0 / jnp.sqrt(jnp.float32(fan_in))
        params[name + "_w"] = jax.random.uniform(
            keys[2 * idx], wshape, jnp.float32, -bound, bound)
        params[name + "_b"] = jax.random.uniform(
            keys[2 * idx + 1], bshape, jnp.float32, -bound, bound)
    return params, conv_out


def ae_forward(params, x, cfg, conv_out_shape):
    pool_k = cfg["pool_k"]
    s = cfg["deconv_stride"]
    n = x.shape[0]

    # ---------------- Encoder: 3x fused (Conv2d + ReLU + AvgPool2d) ---------
    h = jnp.transpose(x, (1, 0, 2, 3)).astype(jnp.float32)    # (C=1, N, H, W)
    for i in range(3):
        h = _fused_conv_relu_pool(
            h, params[f"enc_conv{i}_w"], params[f"enc_conv{i}_b"], pool_k)

    # PyTorch flattens (N, C, H, W) row-major.
    feat = jnp.transpose(h, (1, 0, 2, 3)).reshape(n, -1)

    # -------- Fused encoder-MLP -> latent -> decoder-MLP (one kernel) -------
    d = _fused_mlp(feat, params)                              # (N, lin_in), ReLU'd

    # ---------------- Decoder: 3x ConvTranspose2d ----------------------------
    cc, hc, wc = conv_out_shape
    d = d.reshape(n, cc, hc, wc).transpose(1, 0, 2, 3)        # (C, N, Hc, Wc)
    d = _conv_transpose2d_cnhw(d, params["dec_deconv0_w"], params["dec_deconv0_b"], 1, True)
    d = _conv_transpose2d_cnhw(d, params["dec_deconv1_w"], params["dec_deconv1_b"], s, True)
    d = _conv_transpose2d_cnhw(d, params["dec_deconv2_w"], params["dec_deconv2_b"], s, False)
    d = jnp.transpose(d, (1, 0, 2, 3))                        # (N, 1, Hd, Wd)

    return adaptive_avg_pool2d(d, cfg["image_shape"])


# TODO(synk): the PyTorch `fit()` training loop / torch.save checkpointing is
# host-side training infrastructure and is intentionally not implemented.

if __name__ == "__main__":
    key = jax.random.PRNGKey(0)
    kp, kx = jax.random.split(key)
    params, conv_out_shape = init_params(kp, CFG)

    hgt, wid = CFG["image_shape"]
    x = jax.random.normal(kx, (2, 1, hgt, wid), jnp.float32)  # NCHW, in_channels=1

    fwd = jax.jit(functools.partial(ae_forward, cfg=CFG,
                                    conv_out_shape=conv_out_shape))
    out = fwd(params, x)
    out = jax.block_until_ready(out)

    assert out.shape == (2, 1, hgt, wid), out.shape
    assert out.dtype == jnp.float32
    assert bool(jnp.all(jnp.isfinite(out)))
    print("KERNEL_OK")
</pallas_src>

<mosaic_0001>
module attributes {stable_mosaic.version = 11 : i64} {
  func.func @_conv_relu_pool_kernel(%arg0: memref<8x9xf32, #tpu.memory_space<vmem>>, %arg1: memref<4x9x768xf32, #tpu.memory_space<vmem>>, %arg2: memref<8x1xf32, #tpu.memory_space<vmem>>, %arg3: memref<8x768xf32, #tpu.memory_space<vmem>>) attributes {dimension_semantics = [], scalar_prefetch = 0 : i64, scratch_operands = 0 : i64, tpu.core_type = #tpu.core_type<tc>} {
    %c0 = arith.constant 0 : index
    %c0_0 = arith.constant 0 : index
    %0 = vector.load %arg0[%c0, %c0_0] : memref<8x9xf32, #tpu.memory_space<vmem>>, vector<8x9xf32>
    %c0_1 = arith.constant 0 : index
    %c0_2 = arith.constant 0 : index
    %1 = vector.load %arg2[%c0_1, %c0_2] : memref<8x1xf32, #tpu.memory_space<vmem>>, vector<8x1xf32>
    %c0_3 = arith.constant 0 : index
    %c0_4 = arith.constant 0 : index
    %c0_5 = arith.constant 0 : index
    %2 = vector.load %arg1[%c0_3, %c0_4, %c0_5] : memref<4x9x768xf32, #tpu.memory_space<vmem>>, vector<1x9x768xf32>
    %3 = vector.shape_cast %2 : vector<1x9x768xf32> to vector<9x768xf32>
    %cst = arith.constant dense<0.000000e+00> : vector<8x768xf32>
    %4 = tpu.matmul %0, %3, %cst {dimension_numbers = #tpu.dot_dimension_numbers<[1], [0], [0], [1], [0, 0, 1, 1], [], []>} : vector<8x9xf32>, vector<9x768xf32>, vector<8x768xf32> -> vector<8x768xf32>
    %5 = vector.broadcast %1 : vector<8x1xf32> to vector<8x768xf32>
    %6 = arith.addf %4, %5 : vector<8x768xf32>
    %cst_6 = arith.constant 0.000000e+00 : f32
    %7 = vector.broadcast %cst_6 : f32 to vector<8x768xf32>
    %8 = arith.maximumf %6, %7 : vector<8x768xf32>
    %c1 = arith.constant 1 : index
    %c0_7 = arith.constant 0 : index
    %c0_8 = arith.constant 0 : index
    %9 = vector.load %arg1[%c1, %c0_7, %c0_8] : memref<4x9x768xf32, #tpu.memory_space<vmem>>, vector<1x9x768xf32>
    %10 = vector.shape_cast %9 : vector<1x9x768xf32> to vector<9x768xf32>
    %cst_9 = arith.constant dense<0.000000e+00> : vector<8x768xf32>
    %11 = tpu.matmul %0, %10, %cst_9 {dimension_numbers = #tpu.dot_dimension_numbers<[1], [0], [0], [1], [0, 0, 1, 1], [], []>} : vector<8x9xf32>, vector<9x768xf32>, vector<8x768xf32> -> vector<8x768xf32>
    %12 = vector.broadcast %1 : vector<8x1xf32> to vector<8x768xf32>
    %13 = arith.addf %11, %12 : vector<8x768xf32>
    %cst_10 = arith.constant 0.000000e+00 : f32
    %14 = vector.broadcast %cst_10 : f32 to vector<8x768xf32>
    %15 = arith.maximumf %13, %14 : vector<8x768xf32>
    %16 = arith.addf %8, %15 : vector<8x768xf32>
    %c2 = arith.constant 2 : index
    %c0_11 = arith.constant 0 : index
    %c0_12 = arith.constant 0 : index
    %17 = vector.load %arg1[%c2, %c0_11, %c0_12] : memref<4x9x768xf32, #tpu.memory_space<vmem>>, vector<1x9x768xf32>
    %18 = vector.shape_cast %17 : vector<1x9x768xf32> to vector<9x768xf32>
    %cst_13 = arith.constant dense<0.000000e+00> : vector<8x768xf32>
    %19 = tpu.matmul %0, %18, %cst_13 {dimension_numbers = #tpu.dot_dimension_numbers<[1], [0], [0], [1], [0, 0, 1, 1], [], []>} : vector<8x9xf32>, vector<9x768xf32>, vector<8x768xf32> -> vector<8x768xf32>
    %20 = vector.broadcast %1 : vector<8x1xf32> to vector<8x768xf32>
    %21 = arith.addf %19, %20 : vector<8x768xf32>
    %cst_14 = arith.constant 0.000000e+00 : f32
    %22 = vector.broadcast %cst_14 : f32 to vector<8x768xf32>
    %23 = arith.maximumf %21, %22 : vector<8x768xf32>
    %24 = arith.addf %16, %23 : vector<8x768xf32>
    %c3 = arith.constant 3 : index
    %c0_15 = arith.constant 0 : index
    %c0_16 = arith.constant 0 : index
    %25 = vector.load %arg1[%c3, %c0_15, %c0_16] : memref<4x9x768xf32, #tpu.memory_space<vmem>>, vector<1x9x768xf32>
    %26 = vector.shape_cast %25 : vector<1x9x768xf32> to vector<9x768xf32>
    %cst_17 = arith.constant dense<0.000000e+00> : vector<8x768xf32>
    %27 = tpu.matmul %0, %26, %cst_17 {dimension_numbers = #tpu.dot_dimension_numbers<[1], [0], [0], [1], [0, 0, 1, 1], [], []>} : vector<8x9xf32>, vector<9x768xf32>, vector<8x768xf32> -> vector<8x768xf32>
    %28 = vector.broadcast %1 : vector<8x1xf32> to vector<8x768xf32>
    %29 = arith.addf %27, %28 : vector<8x768xf32>
    %cst_18 = arith.constant 0.000000e+00 : f32
    %30 = vector.broadcast %cst_18 : f32 to vector<8x768xf32>
    %31 = arith.maximumf %29, %30 : vector<8x768xf32>
    %32 = arith.addf %24, %31 : vector<8x768xf32>
    %cst_19 = arith.constant 2.500000e-01 : f32
    %33 = vector.broadcast %cst_19 : f32 to vector<8x768xf32>
    %34 = arith.mulf %32, %33 : vector<8x768xf32>
    %c0_20 = arith.constant 0 : index
    %c0_21 = arith.constant 0 : index
    %35 = vector.load %arg3[%c0_20, %c0_21] : memref<8x768xf32, #tpu.memory_space<vmem>>, vector<8x768xf32>
    tpu.vector_store %arg3[%c0_20, %c0_21], %34 {strides = array<i32>} : memref<8x768xf32, #tpu.memory_space<vmem>>, vector<8x768xf32>,
    return
  }
}

module attributes {stable_mosaic.version = 11 : i64} {
  func.func @_conv_relu_pool_kernel(%arg0: memref<8x72xf32, #tpu.memory_space<vmem>>, %arg1: memref<4x72x128xf32, #tpu.memory_space<vmem>>, %arg2: memref<8x1xf32, #tpu.memory_space<vmem>>, %arg3: memref<8x128xf32, #tpu.memory_space<vmem>>) attributes {dimension_semantics = [], scalar_prefetch = 0 : i64, scratch_operands = 0 : i64, tpu.core_type = #tpu.core_type<tc>} {
    %c0 = arith.constant 0 : index
    %c0_0 = arith.constant 0 : index
    %0 = vector.load %arg0[%c0, %c0_0] : memref<8x72xf32, #tpu.memory_space<vmem>>, vector<8x72xf32>
    %c0_1 = arith.constant 0 : index
    %c0_2 = arith.constant 0 : index
    %1 = vector.load %arg2[%c0_1, %c0_2] : memref<8x1xf32, #tpu.memory_space<vmem>>, vector<8x1xf32>
    %c0_3 = arith.constant 0 : index
    %c0_4 = arith.constant 0 : index
    %c0_5 = arith.constant 0 : index
    %2 = vector.load %arg1[%c0_3, %c0_4, %c0_5] : memref<4x72x128xf32, #tpu.memory_space<vmem>>, vector<1x72x128xf32>
    %3 = vector.shape_cast %2 : vector<1x72x128xf32> to vector<72x128xf32>
    %cst = arith.constant dense<0.000000e+00> : vector<8x128xf32>
    %4 = tpu.matmul %0, %3, %cst {dimension_numbers = #tpu.dot_dimension_numbers<[1], [0], [0], [1], [0, 0, 1, 1], [], []>} : vector<8x72xf32>, vector<72x128xf32>, vector<8x128xf32> -> vector<8x128xf32>
    %5 = vector.broadcast %1 : vector<8x1xf32> to vector<8x128xf32>
    %6 = arith.addf %4, %5 : vector<8x128xf32>
    %cst_6 = arith.constant 0.000000e+00 : f32
    %7 = vector.broadcast %cst_6 : f32 to vector<8x128xf32>
    %8 = arith.maximumf %6, %7 : vector<8x128xf32>
    %c1 = arith.constant 1 : index
    %c0_7 = arith.constant 0 : index
    %c0_8 = arith.constant 0 : index
    %9 = vector.load %arg1[%c1, %c0_7, %c0_8] : memref<4x72x128xf32, #tpu.memory_space<vmem>>, vector<1x72x128xf32>
    %10 = vector.shape_cast %9 : vector<1x72x128xf32> to vector<72x128xf32>
    %cst_9 = arith.constant dense<0.000000e+00> : vector<8x128xf32>
    %11 = tpu.matmul %0, %10, %cst_9 {dimension_numbers = #tpu.dot_dimension_numbers<[1], [0], [0], [1], [0, 0, 1, 1], [], []>} : vector<8x72xf32>, vector<72x128xf32>, vector<8x128xf32> -> vector<8x128xf32>
    %12 = vector.broadcast %1 : vector<8x1xf32> to vector<8x128xf32>
    %13 = arith.addf %11, %12 : vector<8x128xf32>
    %cst_10 = arith.constant 0.000000e+00 : f32
    %14 = vector.broadcast %cst_10 : f32 to vector<8x128xf32>
    %15 = arith.maximumf %13, %14 : vector<8x128xf32>
    %16 = arith.addf %8, %15 : vector<8x128xf32>
    %c2 = arith.constant 2 : index
    %c0_11 = arith.constant 0 : index
    %c0_12 = arith.constant 0 : index
    %17 = vector.load %arg1[%c2, %c0_11, %c0_12] : memref<4x72x128xf32, #tpu.memory_space<vmem>>, vector<1x72x128xf32>
    %18 = vector.shape_cast %17 : vector<1x72x128xf32> to vector<72x128xf32>
    %cst_13 = arith.constant dense<0.000000e+00> : vector<8x128xf32>
    %19 = tpu.matmul %0, %18, %cst_13 {dimension_numbers = #tpu.dot_dimension_numbers<[1], [0], [0], [1], [0, 0, 1, 1], [], []>} : vector<8x72xf32>, vector<72x128xf32>, vector<8x128xf32> -> vector<8x128xf32>
    %20 = vector.broadcast %1 : vector<8x1xf32> to vector<8x128xf32>
    %21 = arith.addf %19, %20 : vector<8x128xf32>
    %cst_14 = arith.constant 0.000000e+00 : f32
    %22 = vector.broadcast %cst_14 : f32 to vector<8x128xf32>
    %23 = arith.maximumf %21, %22 : vector<8x128xf32>
    %24 = arith.addf %16, %23 : vector<8x128xf32>
    %c3 = arith.constant 3 : index
    %c0_15 = arith.constant 0 : index
    %c0_16 = arith.constant 0 : index
    %25 = vector.load %arg1[%c3, %c0_15, %c0_16] : memref<4x72x128xf32, #tpu.memory_space<vmem>>, vector<1x72x128xf32>
    %26 = vector.shape_cast %25 : vector<1x72x128xf32> to vector<72x128xf32>
    %cst_17 = arith.constant dense<0.000000e+00> : vector<8x128xf32>
    %27 = tpu.matmul %0, %26, %cst_17 {dimension_numbers = #tpu.dot_dimension_numbers<[1], [0], [0], [1], [0, 0, 1, 1], [], []>} : vector<8x72xf32>, vector<72x128xf32>, vector<8x128xf32> -> vector<8x128xf32>
    %28 = vector.broadcast %1 : vector<8x1xf32> to vector<8x128xf32>
    %29 = arith.addf %27, %28 : vector<8x128xf32>
    %cst_18 = arith.constant 0.000000e+00 : f32
    %30 = vector.broadcast %cst_18 : f32 to vector<8x128xf32>
    %31 = arith.maximumf %29, %30 : vector<8x128xf32>
    %32 = arith.addf %24, %31 : vector<8x128xf32>
    %cst_19 = arith.constant 2.500000e-01 : f32
    %33 = vector.broadcast %cst_19 : f32 to vector<8x128xf32>
    %34 = arith.mulf %32, %33 : vector<8x128xf32>
    %c0_20 = arith.constant 0 : index
    %c0_21 = arith.constant 0 : index
    %35 = vector.load %arg3[%c0_20, %c0_21] : memref<8x128xf32, #tpu.memory_space<vmem>>, vector<8x128xf32>
    tpu.vector_store %arg3[%c0_20, %c0_21], %34 {strides = array<i32>} : memref<8x128xf32, #tpu.memory_space<vmem>>, vector<8x128xf32>,
    return
  }
}

module attributes {stable_mosaic.version = 11 : i64} {
  func.func @_conv_relu_pool_kernel(%arg0: memref<4x72xf32, #tpu.memory_space<vmem>>, %arg1: memref<4x72x128xf32, #tpu.memory_space<vmem>>, %arg2: memref<4x1xf32, #tpu.memory_space<vmem>>, %arg3: memref<4x128xf32, #tpu.memory_space<vmem>>) attributes {dimension_semantics = [], scalar_prefetch = 0 : i64, scratch_operands = 0 : i64, tpu.core_type = #tpu.core_type<tc>} {
    %c0 = arith.constant 0 : index
    %c0_0 = arith.constant 0 : index
    %0 = vector.load %arg0[%c0, %c0_0] : memref<4x72xf32, #tpu.memory_space<vmem>>, vector<4x72xf32>
    %c0_1 = arith.constant 0 : index
    %c0_2 = arith.constant 0 : index
    %1 = vector.load %arg2[%c0_1, %c0_2] : memref<4x1xf32, #tpu.memory_space<vmem>>, vector<4x1xf32>
    %c0_3 = arith.constant 0 : index
    %c0_4 = arith.constant 0 : index
    %c0_5 = arith.constant 0 : index
    %2 = vector.load %arg1[%c0_3, %c0_4, %c0_5] : memref<4x72x128xf32, #tpu.memory_space<vmem>>, vector<1x72x128xf32>
    %3 = vector.shape_cast %2 : vector<1x72x128xf32> to vector<72x128xf32>
    %cst = arith.constant dense<0.000000e+00> : vector<4x128xf32>
    %4 = tpu.matmul %0, %3, %cst {dimension_numbers = #tpu.dot_dimension_numbers<[1], [0], [0], [1], [0, 0, 1, 1], [], []>} : vector<4x72xf32>, vector<72x128xf32>, vector<4x128xf32> -> vector<4x128xf32>
    %5 = vector.broadcast %1 : vector<4x1xf32> to vector<4x128xf32>
    %6 = arith.addf %4, %5 : vector<4x128xf32>
    %cst_6 = arith.constant 0.000000e+00 : f32
    %7 = vector.broadcast %cst_6 : f32 to vector<4x128xf32>
    %8 = arith.maximumf %6, %7 : vector<4x128xf32>
    %c1 = arith.constant 1 : index
    %c0_7 = arith.constant 0 : index
    %c0_8 = arith.constant 0 : index
    %9 = vector.load %arg1[%c1, %c0_7, %c0_8] : memref<4x72x128xf32, #tpu.memory_space<vmem>>, vector<1x72x128xf32>
    %10 = vector.shape_cast %9 : vector<1x72x128xf32> to vector<72x128xf32>
    %cst_9 = arith.constant dense<0.000000e+00> : vector<4x128xf32>
    %11 = tpu.matmul %0, %10, %cst_9 {dimension_numbers = #tpu.dot_dimension_numbers<[1], [0], [0], [1], [0, 0, 1, 1], [], []>} : vector<4x72xf32>, vector<72x128xf32>, vector<4x128xf32> -> vector<4x128xf32>
    %12 = vector.broadcast %1 : vector<4x1xf32> to vector<4x128xf32>
    %13 = arith.addf %11, %12 : vector<4x128xf32>
    %cst_10 = arith.constant 0.000000e+00 : f32
    %14 = vector.broadcast %cst_10 : f32 to vector<4x128xf32>
    %15 = arith.maximumf %13, %14 : vector<4x128xf32>
    %16 = arith.addf %8, %15 : vector<4x128xf32>
    %c2 = arith.constant 2 : index
    %c0_11 = arith.constant 0 : index
    %c0_12 = arith.constant 0 : index
    %17 = vector.load %arg1[%c2, %c0_11, %c0_12] : memref<4x72x128xf32, #tpu.memory_space<vmem>>, vector<1x72x128xf32>
    %18 = vector.shape_cast %17 : vector<1x72x128xf32> to vector<72x128xf32>
    %cst_13 = arith.constant dense<0.000000e+00> : vector<4x128xf32>
    %19 = tpu.matmul %0, %18, %cst_13 {dimension_numbers = #tpu.dot_dimension_numbers<[1], [0], [0], [1], [0, 0, 1, 1], [], []>} : vector<4x72xf32>, vector<72x128xf32>, vector<4x128xf32> -> vector<4x128xf32>
    %20 = vector.broadcast %1 : vector<4x1xf32> to vector<4x128xf32>
    %21 = arith.addf %19, %20 : vector<4x128xf32>
    %cst_14 = arith.constant 0.000000e+00 : f32
    %22 = vector.broadcast %cst_14 : f32 to vector<4x128xf32>
    %23 = arith.maximumf %21, %22 : vector<4x128xf32>
    %24 = arith.addf %16, %23 : vector<4x128xf32>
    %c3 = arith.constant 3 : index
    %c0_15 = arith.constant 0 : index
    %c0_16 = arith.constant 0 : index
    %25 = vector.load %arg1[%c3, %c0_15, %c0_16] : memref<4x72x128xf32, #tpu.memory_space<vmem>>, vector<1x72x128xf32>
    %26 = vector.shape_cast %25 : vector<1x72x128xf32> to vector<72x128xf32>
    %cst_17 = arith.constant dense<0.000000e+00> : vector<4x128xf32>
    %27 = tpu.matmul %0, %26, %cst_17 {dimension_numbers = #tpu.dot_dimension_numbers<[1], [0], [0], [1], [0, 0, 1, 1], [], []>} : vector<4x72xf32>, vector<72x128xf32>, vector<4x128xf32> -> vector<4x128xf32>
    %28 = vector.broadcast %1 : vector<4x1xf32> to vector<4x128xf32>
    %29 = arith.addf %27, %28 : vector<4x128xf32>
    %cst_18 = arith.constant 0.000000e+00 : f32
    %30 = vector.broadcast %cst_18 : f32 to vector<4x128xf32>
    %31 = arith.maximumf %29, %30 : vector<4x128xf32>
    %32 = arith.addf %24, %31 : vector<4x128xf32>
    %cst_19 = arith.constant 2.500000e-01 : f32
    %33 = vector.broadcast %cst_19 : f32 to vector<4x128xf32>
    %34 = arith.mulf %32, %33 : vector<4x128xf32>
    %c0_20 = arith.constant 0 : index
    %c0_21 = arith.constant 0 : index
    %35 = vector.load %arg3[%c0_20, %c0_21] : memref<4x128xf32, #tpu.memory_space<vmem>>, vector<4x128xf32>
    tpu.vector_store %arg3[%c0_20, %c0_21], %34 {strides = array<i32>} : memref<4x128xf32, #tpu.memory_space<vmem>>, vector<4x128xf32>,
    return
  }
}

module attributes {stable_mosaic.version = 11 : i64} {
  func.func @_mlp_kernel(%arg0: memref<2x24xf32, #tpu.memory_space<vmem>>, %arg1: memref<24x32xf32, #tpu.memory_space<vmem>>, %arg2: memref<1x32xf32, #tpu.memory_space<vmem>>, %arg3: memref<32x16xf32, #tpu.memory_space<vmem>>, %arg4: memref<1x16xf32, #tpu.memory_space<vmem>>, %arg5: memref<16x2xf32, #tpu.memory_space<vmem>>, %arg6: memref<1x2xf32, #tpu.memory_space<vmem>>, %arg7: memref<2x16xf32, #tpu.memory_space<vmem>>, %arg8: memref<1x16xf32, #tpu.memory_space<vmem>>, %arg9: memref<16x32xf32, #tpu.memory_space<vmem>>, %arg10: memref<1x32xf32, #tpu.memory_space<vmem>>, %arg11: memref<32x24xf32, #tpu.memory_space<vmem>>, %arg12: memref<1x24xf32, #tpu.memory_space<vmem>>, %arg13: memref<2x24xf32, #tpu.memory_space<vmem>>) attributes {dimension_semantics = [], scalar_prefetch = 0 : i64, scratch_operands = 0 : i64, tpu.core_type = #tpu.core_type<tc>} {
    %c0 = arith.constant 0 : index
    %c0_0 = arith.constant 0 : index
    %0 = vector.load %arg0[%c0, %c0_0] : memref<2x24xf32, #tpu.memory_space<vmem>>, vector<2x24xf32>
    %c0_1 = arith.constant 0 : index
    %c0_2 = arith.constant 0 : index
    %1 = vector.load %arg1[%c0_1, %c0_2] : memref<24x32xf32, #tpu.memory_space<vmem>>, vector<24x32xf32>
    %cst = arith.constant dense<0.000000e+00> : vector<2x32xf32>
    %2 = tpu.matmul %0, %1, %cst {dimension_numbers = #tpu.dot_dimension_numbers<[1], [0], [0], [1], [0, 0, 1, 1], [], []>} : vector<2x24xf32>, vector<24x32xf32>, vector<2x32xf32> -> vector<2x32xf32>
    %c0_3 = arith.constant 0 : index
    %c0_4 = arith.constant 0 : index
    %3 = vector.load %arg2[%c0_3, %c0_4] : memref<1x32xf32, #tpu.memory_space<vmem>>, vector<1x32xf32>
    %4 = vector.broadcast %3 : vector<1x32xf32> to vector<2x32xf32>
    %5 = arith.addf %2, %4 : vector<2x32xf32>
    %cst_5 = arith.constant 0.000000e+00 : f32
    %6 = vector.broadcast %cst_5 : f32 to vector<2x32xf32>
    %7 = arith.maximumf %5, %6 : vector<2x32xf32>
    %c0_6 = arith.constant 0 : index
    %c0_7 = arith.constant 0 : index
    %8 = vector.load %arg3[%c0_6, %c0_7] : memref<32x16xf32, #tpu.memory_space<vmem>>, vector<32x16xf32>
    %cst_8 = arith.constant dense<0.000000e+00> : vector<2x16xf32>
    %9 = tpu.matmul %7, %8, %cst_8 {dimension_numbers = #tpu.dot_dimension_numbers<[1], [0], [0], [1], [0, 0, 1, 1], [], []>} : vector<2x32xf32>, vector<32x16xf32>, vector<2x16xf32> -> vector<2x16xf32>
    %c0_9 = arith.constant 0 : index
    %c0_10 = arith.constant 0 : index
    %10 = vector.load %arg4[%c0_9, %c0_10] : memref<1x16xf32, #tpu.memory_space<vmem>>, vector<1x16xf32>
    %11 = vector.broadcast %10 : vector<1x16xf32> to vector<2x16xf32>
    %12 = arith.addf %9, %11 : vector<2x16xf32>
    %cst_11 = arith.constant 0.000000e+00 : f32
    %13 = vector.broadcast %cst_11 : f32 to vector<2x16xf32>
    %14 = arith.maximumf %12, %13 : vector<2x16xf32>
    %c0_12 = arith.constant 0 : index
    %c0_13 = arith.constant 0 : index
    %15 = vector.load %arg5[%c0_12, %c0_13] : memref<16x2xf32, #tpu.memory_space<vmem>>, vector<16x2xf32>
    %cst_14 = arith.constant dense<0.000000e+00> : vector<2x2xf32>
    %16 = tpu.matmul %14, %15, %cst_14 {dimension_numbers = #tpu.dot_dimension_numbers<[1], [0], [0], [1], [0, 0, 1, 1], [], []>} : vector<2x16xf32>, vector<16x2xf32>, vector<2x2xf32> -> vector<2x2xf32>
    %c0_15 = arith.constant 0 : index
    %c0_16 = arith.constant 0 : index
    %17 = vector.load %arg6[%c0_15, %c0_16] : memref<1x2xf32, #tpu.memory_space<vmem>>, vector<1x2xf32>
    %18 = vector.broadcast %17 : vector<1x2xf32> to vector<2x2xf32>
    %19 = arith.addf %16, %18 : vector<2x2xf32>
    %c0_17 = arith.constant 0 : index
    %c0_18 = arith.constant 0 : index
    %20 = vector.load %arg7[%c0_17, %c0_18] : memref<2x16xf32, #tpu.memory_space<vmem>>, vector<2x16xf32>
    %cst_19 = arith.constant dense<0.000000e+00> : vector<2x16xf32>
    %21 = tpu.matmul %19, %20, %cst_19 {dimension_numbers = #tpu.dot_dimension_numbers<[1], [0], [0], [1], [0, 0, 1, 1], [], []>} : vector<2x2xf32>, vector<2x16xf32>, vector<2x16xf32> -> vector<2x16xf32>
    %c0_20 = arith.constant 0 : index
    %c0_21 = arith.constant 0 : index
    %22 = vector.load %arg8[%c0_20, %c0_21] : memref<1x16xf32, #tpu.memory_space<vmem>>, vector<1x16xf32>
    %23 = vector.broadcast %22 : vector<1x16xf32> to vector<2x16xf32>
    %24 = arith.addf %21, %23 : vector<2x16xf32>
    %cst_22 = arith.constant 0.000000e+00 : f32
    %25 = vector.broadcast %cst_22 : f32 to vector<2x16xf32>
    %26 = arith.maximumf %24, %25 : vector<2x16xf32>
    %c0_23 = arith.constant 0 : index
    %c0_24 = arith.constant 0 : index
    %27 = vector.load %arg9[%c0_23, %c0_24] : memref<16x32xf32, #tpu.memory_space<vmem>>, vector<16x32xf32>
    %cst_25 = arith.constant dense<0.000000e+00> : vector<2x32xf32>
    %28 = tpu.matmul %26, %27, %cst_25 {dimension_numbers = #tpu.dot_dimension_numbers<[1], [0], [0], [1], [0, 0, 1, 1], [], []>} : vector<2x16xf32>, vector<16x32xf32>, vector<2x32xf32> -> vector<2x32xf32>
    %c0_26 = arith.constant 0 : index
    %c0_27 = arith.constant 0 : index
    %29 = vector.load %arg10[%c0_26, %c0_27] : memref<1x32xf32, #tpu.memory_space<vmem>>, vector<1x32xf32>
    %30 = vector.broadcast %29 : vector<1x32xf32> to vector<2x32xf32>
    %31 = arith.addf %28, %30 : vector<2x32xf32>
    %cst_28 = arith.constant 0.000000e+00 : f32
    %32 = vector.broadcast %cst_28 : f32 to vector<2x32xf32>
    %33 = arith.maximumf %31, %32 : vector<2x32xf32>
    %c0_29 = arith.constant 0 : index
    %c0_30 = arith.constant 0 : index
    %34 = vector.load %arg11[%c0_29, %c0_30] : memref<32x24xf32, #tpu.memory_space<vmem>>, vector<32x24xf32>
    %cst_31 = arith.constant dense<0.000000e+00> : vector<2x24xf32>
    %35 = tpu.matmul %33, %34, %cst_31 {dimension_numbers = #tpu.dot_dimension_numbers<[1], [0], [0], [1], [0, 0, 1, 1], [], []>} : vector<2x32xf32>, vector<32x24xf32>, vector<2x24xf32> -> vector<2x24xf32>
    %c0_32 = arith.constant 0 : index
    %c0_33 = arith.constant 0 : index
    %36 = vector.load %arg12[%c0_32, %c0_33] : memref<1x24xf32, #tpu.memory_space<vmem>>, vector<1x24xf32>
    %37 = vector.broadcast %36 : vector<1x24xf32> to vector<2x24xf32>
    %38 = arith.addf %35, %37 : vector<2x24xf32>
    %cst_34 = arith.constant 0.000000e+00 : f32
    %39 = vector.broadcast %cst_34 : f32 to vector<2x24xf32>
    %40 = arith.maximumf %38, %39 : vector<2x24xf32>
    %c0_35 = arith.constant 0 : index
    %c0_36 = arith.constant 0 : index
    %41 = vector.load %arg13[%c0_35, %c0_36] : memref<2x24xf32, #tpu.memory_space<vmem>>, vector<2x24xf32>
    tpu.vector_store %arg13[%c0_35, %c0_36], %40 {strides = array<i32>} : memref<2x24xf32, #tpu.memory_space<vmem>>, vector<2x24xf32>,
    return
  }
}

module attributes {stable_mosaic.version = 11 : i64} {
  func.func @_conv_bias_act_kernel(%arg0: memref<8x36xf32, #tpu.memory_space<vmem>>, %arg1: memref<36x128xf32, #tpu.memory_space<vmem>>, %arg2: memref<8x1xf32, #tpu.memory_space<vmem>>, %arg3: memref<8x128xf32, #tpu.memory_space<vmem>>) attributes {dimension_semantics = [], scalar_prefetch = 0 : i64, scratch_operands = 0 : i64, tpu.core_type = #tpu.core_type<tc>} {
    %c0 = arith.constant 0 : index
    %c0_0 = arith.constant 0 : index
    %0 = vector.load %arg0[%c0, %c0_0] : memref<8x36xf32, #tpu.memory_space<vmem>>, vector<8x36xf32>
    %c0_1 = arith.constant 0 : index
    %c0_2 = arith.constant 0 : index
    %1 = vector.load %arg1[%c0_1, %c0_2] : memref<36x128xf32, #tpu.memory_space<vmem>>, vector<36x128xf32>
    %cst = arith.constant dense<0.000000e+00> : vector<8x128xf32>
    %2 = tpu.matmul %0, %1, %cst {dimension_numbers = #tpu.dot_dimension_numbers<[1], [0], [0], [1], [0, 0, 1, 1], [], []>} : vector<8x36xf32>, vector<36x128xf32>, vector<8x128xf32> -> vector<8x128xf32>
    %c0_3 = arith.constant 0 : index
    %c0_4 = arith.constant 0 : index
    %3 = vector.load %arg2[%c0_3, %c0_4] : memref<8x1xf32, #tpu.memory_space<vmem>>, vector<8x1xf32>
    %4 = vector.broadcast %3 : vector<8x1xf32> to vector<8x128xf32>
    %5 = arith.addf %2, %4 : vector<8x128xf32>
    %cst_5 = arith.constant 0.000000e+00 : f32
    %6 = vector.broadcast %cst_5 : f32 to vector<8x128xf32>
    %7 = arith.maximumf %5, %6 : vector<8x128xf32>
    %c0_6 = arith.constant 0 : index
    %c0_7 = arith.constant 0 : index
    %8 = vector.load %arg3[%c0_6, %c0_7] : memref<8x128xf32, #tpu.memory_space<vmem>>, vector<8x128xf32>
    tpu.vector_store %arg3[%c0_6, %c0_7], %7 {strides = array<i32>} : memref<8x128xf32, #tpu.memory_space<vmem>>, vector<8x128xf32>,
    return
  }
}

module attributes {stable_mosaic.version = 11 : i64} {
  func.func @_conv_bias_act_kernel(%arg0: memref<8x72xf32, #tpu.memory_space<vmem>>, %arg1: memref<72x256xf32, #tpu.memory_space<vmem>>, %arg2: memref<8x1xf32, #tpu.memory_space<vmem>>, %arg3: memref<8x256xf32, #tpu.memory_space<vmem>>) attributes {dimension_semantics = [], scalar_prefetch = 0 : i64, scratch_operands = 0 : i64, tpu.core_type = #tpu.core_type<tc>} {
    %c0 = arith.constant 0 : index
    %c0_0 = arith.constant 0 : index
    %0 = vector.load %arg0[%c0, %c0_0] : memref<8x72xf32, #tpu.memory_space<vmem>>, vector<8x72xf32>
    %c0_1 = arith.constant 0 : index
    %c0_2 = arith.constant 0 : index
    %1 = vector.load %arg1[%c0_1, %c0_2] : memref<72x256xf32, #tpu.memory_space<vmem>>, vector<72x256xf32>
    %cst = arith.constant dense<0.000000e+00> : vector<8x256xf32>
    %2 = tpu.matmul %0, %1, %cst {dimension_numbers = #tpu.dot_dimension_numbers<[1], [0], [0], [1], [0, 0, 1, 1], [], []>} : vector<8x72xf32>, vector<72x256xf32>, vector<8x256xf32> -> vector<8x256xf32>
    %c0_3 = arith.constant 0 : index
    %c0_4 = arith.constant 0 : index
    %3 = vector.load %arg2[%c0_3, %c0_4] : memref<8x1xf32, #tpu.memory_space<vmem>>, vector<8x1xf32>
    %4 = vector.broadcast %3 : vector<8x1xf32> to vector<8x256xf32>
    %5 = arith.addf %2, %4 : vector<8x256xf32>
    %cst_5 = arith.constant 0.000000e+00 : f32
    %6 = vector.broadcast %cst_5 : f32 to vector<8x256xf32>
    %7 = arith.maximumf %5, %6 : vector<8x256xf32>
    %c0_6 = arith.constant 0 : index
    %c0_7 = arith.constant 0 : index
    %8 = vector.load %arg3[%c0_6, %c0_7] : memref<8x256xf32, #tpu.memory_space<vmem>>, vector<8x256xf32>
    tpu.vector_store %arg3[%c0_6, %c0_7], %7 {strides = array<i32>} : memref<8x256xf32, #tpu.memory_space<vmem>>, vector<8x256xf32>,
    return
  }
}

module attributes {stable_mosaic.version = 11 : i64} {
  func.func @_conv_bias_act_kernel(%arg0: memref<1x72xf32, #tpu.memory_space<vmem>>, %arg1: memref<72x896xf32, #tpu.memory_space<vmem>>, %arg2: memref<1x1xf32, #tpu.memory_space<vmem>>, %arg3: memref<1x896xf32, #tpu.memory_space<vmem>>) attributes {dimension_semantics = [], scalar_prefetch = 0 : i64, scratch_operands = 0 : i64, tpu.core_type = #tpu.core_type<tc>} {
    %c0 = arith.constant 0 : index
    %c0_0 = arith.constant 0 : index
    %0 = vector.load %arg0[%c0, %c0_0] : memref<1x72xf32, #tpu.memory_space<vmem>>, vector<1x72xf32>
    %c0_1 = arith.constant 0 : index
    %c0_2 = arith.constant 0 : index
    %1 = vector.load %arg1[%c0_1, %c0_2] : memref<72x896xf32, #tpu.memory_space<vmem>>, vector<72x896xf32>
    %cst = arith.constant dense<0.000000e+00> : vector<1x896xf32>
    %2 = tpu.matmul %0, %1, %cst {dimension_numbers = #tpu.dot_dimension_numbers<[1], [0], [0], [1], [0, 0, 1, 1], [], []>} : vector<1x72xf32>, vector<72x896xf32>, vector<1x896xf32> -> vector<1x896xf32>
    %c0_3 = arith.constant 0 : index
    %c0_4 = arith.constant 0 : index
    %3 = vector.load %arg2[%c0_3, %c0_4] : memref<1x1xf32, #tpu.memory_space<vmem>>, vector<1x1xf32>
    %4 = vector.broadcast %3 : vector<1x1xf32> to vector<1x896xf32>
    %5 = arith.addf %2, %4 : vector<1x896xf32>
    %c0_5 = arith.constant 0 : index
    %c0_6 = arith.constant 0 : index
    %6 = vector.load %arg3[%c0_5, %c0_6] : memref<1x896xf32, #tpu.memory_space<vmem>>, vector<1x896xf32>
    tpu.vector_store %arg3[%c0_5, %c0_6], %5 {strides = array<i32>} : memref<1x896xf32, #tpu.memory_space<vmem>>, vector<1x896xf32>,
    return
  }
}

module attributes {stable_mosaic.version = 11 : i64} {
  func.func @_adaptive_pool_kernel(%arg0: memref<2x19x23xf32, #tpu.memory_space<vmem>>, %arg1: memref<36x19xf32, #tpu.memory_space<vmem>>, %arg2: memref<23x44xf32, #tpu.memory_space<vmem>>, %arg3: memref<2x36x44xf32, #tpu.memory_space<vmem>>) attributes {dimension_semantics = [], scalar_prefetch = 0 : i64, scratch_operands = 0 : i64, tpu.core_type = #tpu.core_type<tc>} {
    %c0 = arith.constant 0 : index
    %c0_0 = arith.constant 0 : index
    %0 = vector.load %arg1[%c0, %c0_0] : memref<36x19xf32, #tpu.memory_space<vmem>>, vector<36x19xf32>
    %c0_1 = arith.constant 0 : index
    %c0_2 = arith.constant 0 : index
    %1 = vector.load %arg2[%c0_1, %c0_2] : memref<23x44xf32, #tpu.memory_space<vmem>>, vector<23x44xf32>
    %c0_3 = arith.constant 0 : index
    %c0_4 = arith.constant 0 : index
    %c0_5 = arith.constant 0 : index
    %2 = vector.load %arg0[%c0_3, %c0_4, %c0_5] : memref<2x19x23xf32, #tpu.memory_space<vmem>>, vector<1x19x23xf32>
    %3 = vector.shape_cast %2 : vector<1x19x23xf32> to vector<19x23xf32>
    %cst = arith.constant dense<0.000000e+00> : vector<36x23xf32>
    %4 = tpu.matmul %0, %3, %cst {dimension_numbers = #tpu.dot_dimension_numbers<[1], [0], [0], [1], [0, 0, 1, 1], [], []>} : vector<36x19xf32>, vector<19x23xf32>, vector<36x23xf32> -> vector<36x23xf32>
    %cst_6 = arith.constant dense<0.000000e+00> : vector<36x44xf32>
    %5 = tpu.matmul %4, %1, %cst_6 {dimension_numbers = #tpu.dot_dimension_numbers<[1], [0], [0], [1], [0, 0, 1, 1], [], []>} : vector<36x23xf32>, vector<23x44xf32>, vector<36x44xf32> -> vector<36x44xf32>
    %c0_7 = arith.constant 0 : index
    %c0_8 = arith.constant 0 : index
    %c0_9 = arith.constant 0 : index
    %6 = vector.load %arg3[%c0_7, %c0_8, %c0_9] : memref<2x36x44xf32, #tpu.memory_space<vmem>>, vector<1x36x44xf32>
    %7 = vector.shape_cast %6 : vector<1x36x44xf32> to vector<36x44xf32>
    %8 = vector.shape_cast %5 : vector<36x44xf32> to vector<1x36x44xf32>
    tpu.vector_store %arg3[%c0_7, %c0_8, %c0_9], %8 {strides = array<i32>} : memref<2x36x44xf32, #tpu.memory_space<vmem>>, vector<1x36x44xf32>,
    %c1 = arith.constant 1 : index
    %c0_10 = arith.constant 0 : index
    %c0_11 = arith.constant 0 : index
    %9 = vector.load %arg0[%c1, %c0_10, %c0_11] : memref<2x19x23xf32, #tpu.memory_space<vmem>>, vector<1x19x23xf32>
    %10 = vector.shape_cast %9 : vector<1x19x23xf32> to vector<19x23xf32>
    %cst_12 = arith.constant dense<0.000000e+00> : vector<36x23xf32>
    %11 = tpu.matmul %0, %10, %cst_12 {dimension_numbers = #tpu.dot_dimension_numbers<[1], [0], [0], [1], [0, 0, 1, 1], [], []>} : vector<36x19xf32>, vector<19x23xf32>, vector<36x23xf32> -> vector<36x23xf32>
    %cst_13 = arith.constant dense<0.000000e+00> : vector<36x44xf32>
    %12 = tpu.matmul %11, %1, %cst_13 {dimension_numbers = #tpu.dot_dimension_numbers<[1], [0], [0], [1], [0, 0, 1, 1], [], []>} : vector<36x23xf32>, vector<23x44xf32>, vector<36x44xf32> -> vector<36x44xf32>
    %c1_14 = arith.constant 1 : index
    %c0_15 = arith.constant 0 : index
    %c0_16 = arith.constant 0 : index
    %13 = vector.load %arg3[%c1_14, %c0_15, %c0_16] : memref<2x36x44xf32, #tpu.memory_space<vmem>>, vector<1x36x44xf32>
    %14 = vector.shape_cast %13 : vector<1x36x44xf32> to vector<36x44xf32>
    %15 = vector.shape_cast %12 : vector<36x44xf32> to vector<1x36x44xf32>
    tpu.vector_store %arg3[%c1_14, %c0_15, %c0_16], %15 {strides = array<i32>} : memref<2x36x44xf32, #tpu.memory_space<vmem>>, vector<1x36x44xf32>,
    return
  }
}

</mosaic_0001>

<bundles_post_ra>
// kernel: ae_forward.8
= control target key start
LH: loop header
LB: loop body
LE: loop exit
PB: predicated region body
PF: predicated region fallthrough
CT: control target
= control target key end

     0   :  { %vm37_vm0 = vcmask 1040384   ;;  %v773_v3 = vmov 0   ;;  %vm33_vm1 = vcmask 72704   ;;  %s1062_s1 = inlined_call_operand.vmem [shape: f32[4,9,768], index: 1, kind: input, shape index: {}]   ;;  %s1063_s0 = inlined_call_operand.vmem [shape: f32[8,9], index: 0, kind: input, shape index: {}]   ;;  %s1064_s2 = inlined_call_operand.vmem [shape: f32[8,1], index: 2, kind: input, shape index: {}]   ;;  %s1065_s3 = inlined_call_operand.vmem [shape: f32[8,768], index: 3, kind: output, shape index: {}]  }
   0x1   :  { %v22_v0 = vld [vmem:[%s1062_s1 + $0x30] sm:$0x1]  ;;  %v23_v1 = vld [vmem:[%s1062_s1 + $0x38] sm:$0x1]  ;;  %v24_v2 = vld [vmem:[%s1062_s1 + $0x40] sm:$0x1]  ;;  %772 = vset.pattern.permute.xlu0 %v773_v3 }
   0x2   :  { %687 = vmatpush.msk.msra.mxu0 %vm37_vm0, %v22_v0  ;;  %689 = vmatpush.msk.msra.mxu1 %vm37_vm0, %v23_v1  ;;  %v25_v4 = vld [vmem:[%s1062_s1 + $0x48] sm:$0x1]  ;;  %v16_v5 = vld [vmem:[%s1062_s1] sm:$0xff]  ;;  %v18_v7 = vld [vmem:[%s1062_s1 + $0x10] sm:$0xff] }
   0x3   :  { %v17_v6 = vld [vmem:[%s1062_s1 + $0x8] sm:$0xff]  ;;  %691 = vmatpush.msk.msra.mxu2 %vm37_vm0, %v24_v2  ;;  %693 = vmatpush.msk.msra.mxu3 %vm37_vm0, %v25_v4  ;;  %v19_v8 = vld [vmem:[%s1062_s1 + $0x18] sm:$0xff]  ;;  %v825_v9 = vld [vmem:[%s1063_s0] sm:$0xff] }
   0x4   :  { %71 = vmatpush.msra.mxu0 %v16_v5  ;;  %91 = vmatpush.msra.mxu1 %v17_v6  ;;  %v705_v10 = vld [vmem:[%s1062_s1 + $0x90] sm:$0x1]  ;;  %v706_v11 = vld [vmem:[%s1062_s1 + $0x98] sm:$0x1]  ;;  %v699_v14 = vld [vmem:[%s1062_s1 + $0x60] sm:$0xff] }
   0x5   :  { %111 = vmatpush.msra.mxu2 %v18_v7  ;;  %131 = vmatpush.msra.mxu3 %v19_v8  ;;  %v26_v12 = vld [vmem:[%s1062_s1 + $0x50] sm:$0x1]  ;;  %v27_v13 = vld [vmem:[%s1062_s1 + $0x58] sm:$0x1]  ;;  %v700_v15 = vld [vmem:[%s1062_s1 + $0x68] sm:$0xff] }
   0x6   :  { %688 = vmatmul.msk.f32.vlgmr.msra.gmra.mxu0 %vm33_vm1, %v825_v9  ;;  %690 = vmatmul.msk.f32.vlgmr.msra.gmra.mxu1 %vm33_vm1, %v825_v9  ;;  %v20_v16 = vld [vmem:[%s1062_s1 + $0x20] sm:$0xff]  ;;  %v21_v17 = vld [vmem:[%s1062_s1 + $0x28] sm:$0xff]  ;;  %v709_v18 = vld [vmem:[%s1062_s1 + $0xb0] sm:$0x1] }
   0x7   :  { %692 = vmatmul.msk.f32.vlgmr.msra.gmra.mxu2 %vm33_vm1, %v825_v9  ;;  %694 = vmatmul.msk.f32.vlgmr.msra.gmra.mxu3 %vm33_vm1, %v825_v9  ;;  %v710_v19 = vld [vmem:[%s1062_s1 + $0xb8] sm:$0x1]  ;;  %v707_v20 = vld [vmem:[%s1062_s1 + $0xa0] sm:$0x1]  ;;  %v708_v21 = vld [vmem:[%s1062_s1 + $0xa8] sm:$0x1] }
   0x8   :  { %711 = vmatpush.msk.msrb.mxu2 %vm37_vm0, %v705_v10  ;;  %713 = vmatpush.msk.msrb.mxu3 %vm37_vm0, %v706_v11  ;;  %v703_v22 = vld [vmem:[%s1062_s1 + $0x80] sm:$0xff]  ;;  %v704_v23 = vld [vmem:[%s1062_s1 + $0x88] sm:$0xff]  ;;  %v701_v24 = vld [vmem:[%s1062_s1 + $0x70] sm:$0xff] }
   0x9   :  { %695 = vmatpush.msk.msrb.mxu0 %vm37_vm0, %v26_v12  ;;  %697 = vmatpush.msk.msrb.mxu1 %vm37_vm0, %v27_v13  ;;  %v702_v25 = vld [vmem:[%s1062_s1 + $0x78] sm:$0xff]  ;;  %v731_v26 = vld [vmem:[%s1062_s1 + $0x100] sm:$0x1]  ;;  %v732_v27 = vld [vmem:[%s1062_s1 + $0x108] sm:$0x1] }
   0xa   :  { %228 = vmatpush.msrb.mxu2 %v699_v14  ;;  %248 = vmatpush.msrb.mxu3 %v700_v15  ;;  %v15_v28 = vld [vmem:[%s1064_s2] sm:$0xff]  ;;  %v729_v29 = vld [vmem:[%s1062_s1 + $0xf0] sm:$0x1]  ;;  %v726_v31 = vld [vmem:[%s1062_s1 + $0xd8] sm:$0xff] }
   0xb   :  { %151 = vmatpush.msrb.mxu0 %v20_v16  ;;  %171 = vmatpush.msrb.mxu1 %v21_v17  ;;  %v725_v30 = vld [vmem:[%s1062_s1 + $0xd0] sm:$0xff]  ;;  %v730_v32 = vld [vmem:[%s1062_s1 + $0xf8] sm:$0x1]  ;;  %v723_v33 = vld [vmem:[%s1062_s1 + $0xc0] sm:$0xff] }
   0xc   :  { %719 = vmatpush.msk.msra.mxu2 %vm37_vm0, %v709_v18  ;;  %721 = vmatpush.msk.msra.mxu3 %vm37_vm0, %v710_v19  ;;  %v724_v34 = vld [vmem:[%s1062_s1 + $0xc8] sm:$0xff]  ;;  %v753_v35 = vld [vmem:[%s1062_s1 + $0x150] sm:$0x1]  ;;  %v754_v36 = vld [vmem:[%s1062_s1 + $0x158] sm:$0x1] }
   0xd   :  { %715 = vmatpush.msk.msra.mxu0 %vm37_vm0, %v707_v20  ;;  %717 = vmatpush.msk.msra.mxu1 %vm37_vm0, %v708_v21  ;;  %v733_v37 = vld [vmem:[%s1062_s1 + $0x110] sm:$0x1]  ;;  %v747_v38 = vld [vmem:[%s1062_s1 + $0x120] sm:$0xff]  ;;  %v734_v39 = vld [vmem:[%s1062_s1 + $0x118] sm:$0x1] }
   0xe   :  { %696 = vmatmul.msk.f32.vlgmr.msrb.gmra.mxu0 %vm33_vm1, %v825_v9  ;;  %698 = vmatmul.msk.f32.vlgmr.msrb.gmra.mxu1 %vm33_vm1, %v825_v9  ;;  %v748_v40 = vld [vmem:[%s1062_s1 + $0x128] sm:$0xff]  ;;  %v727_v41 = vld [vmem:[%s1062_s1 + $0xe0] sm:$0xff]  ;;  %v757_v43 = vld [vmem:[%s1062_s1 + $0x170] sm:$0x1] }
   0xf   :  { %712 = vmatmul.msk.f32.vlgmr.msrb.gmra.mxu2 %vm33_vm1, %v825_v9  ;;  %714 = vmatmul.msk.f32.vlgmr.msrb.gmra.mxu3 %vm33_vm1, %v825_v9  ;;  %v728_v42 = vld [vmem:[%s1062_s1 + $0xe8] sm:$0xff]  ;;  %v758_v44 = vld [vmem:[%s1062_s1 + $0x178] sm:$0x1]  ;;  %v755_v45 = vld [vmem:[%s1062_s1 + $0x160] sm:$0x1] }
  0x10   :  { %308 = vmatpush.msra.mxu2 %v703_v22  ;;  %328 = vmatpush.msra.mxu3 %v704_v23  ;;  %v756_v46 = vld [vmem:[%s1062_s1 + $0x168] sm:$0x1]  ;;  %v751_v47 = vld [vmem:[%s1062_s1 + $0x140] sm:$0xff]  ;;  %v749_v49 = vld [vmem:[%s1062_s1 + $0x130] sm:$0xff] }
  0x11   :  { %268 = vmatpush.msra.mxu0 %v701_v24  ;;  %288 = vmatpush.msra.mxu1 %v702_v25  ;;  %v752_v48 = vld [vmem:[%s1062_s1 + $0x148] sm:$0xff]  ;;  %v750_v50 = vld [vmem:[%s1062_s1 + $0x138] sm:$0xff] }
  0x12   :  { %739 = vmatpush.msk.msrb.mxu2 %vm37_vm0, %v731_v26  ;;  %741 = vmatpush.msk.msrb.mxu3 %vm37_vm0, %v732_v27 }
  0x13   :  { %30 = vperm.xlu0 %772, %v15_v28   ;;  %735 = vmatpush.msk.msrb.mxu0 %vm37_vm0, %v729_v29 }
  0x14   :  { %431 = vmatpush.msrb.mxu2 %v725_v30  ;;  %451 = vmatpush.msrb.mxu3 %v726_v31 }
  0x15   :  { %737 = vmatpush.msk.msrb.mxu1 %vm37_vm0, %v730_v32  ;;  %391 = vmatpush.msrb.mxu0 %v723_v33 }
  0x16   :  { %716 = vmatmul.msk.f32.vlgmr.msra.gmra.mxu0 %vm33_vm1, %v825_v9  ;;  %718 = vmatmul.msk.f32.vlgmr.msra.gmra.mxu1 %vm33_vm1, %v825_v9 }
  0x17   :  { %720 = vmatmul.msk.f32.vlgmr.msra.gmra.mxu2 %vm33_vm1, %v825_v9  ;;  %722 = vmatmul.msk.f32.vlgmr.msra.gmra.mxu3 %vm33_vm1, %v825_v9 }
  0x18   :  { %411 = vmatpush.msrb.mxu1 %v724_v34  ;;  %759 = vmatpush.msk.msra.mxu2 %vm37_vm0, %v753_v35 }
  0x19   :  { %761 = vmatpush.msk.msra.mxu3 %vm37_vm0, %v754_v36  ;;  %743 = vmatpush.msk.msra.mxu0 %vm37_vm0, %v733_v37 }
  0x1a   :  { %554 = vmatpush.msra.mxu2 %v747_v38  ;;  %745 = vmatpush.msk.msra.mxu1 %vm37_vm0, %v734_v39 }
  0x1b   :  { %574 = vmatpush.msra.mxu3 %v748_v40  ;;  %471 = vmatpush.msra.mxu0 %v727_v41 }
  0x1c   :  { %491 = vmatpush.msra.mxu1 %v728_v42 }
  0x1e   :  { %736 = vmatmul.msk.f32.vlgmr.msrb.gmra.mxu0 %vm33_vm1, %v825_v9  ;;  %738 = vmatmul.msk.f32.vlgmr.msrb.gmra.mxu1 %vm33_vm1, %v825_v9 }
  0x1f   :  { %740 = vmatmul.msk.f32.vlgmr.msrb.gmra.mxu2 %vm33_vm1, %v825_v9  ;;  %742 = vmatmul.msk.f32.vlgmr.msrb.gmra.mxu3 %vm33_vm1, %v825_v9 }
  0x20   :  { %767 = vmatpush.msk.msrb.mxu2 %vm37_vm0, %v757_v43  ;;  %769 = vmatpush.msk.msrb.mxu3 %vm37_vm0, %v758_v44 }
  0x21   :  { %763 = vmatpush.msk.msrb.mxu0 %vm37_vm0, %v755_v45  ;;  %765 = vmatpush.msk.msrb.mxu1 %vm37_vm0, %v756_v46 }
  0x22   :  { %634 = vmatpush.msrb.mxu2 %v751_v47  ;;  %654 = vmatpush.msrb.mxu3 %v752_v48 }
  0x23   :  { %594 = vmatpush.msrb.mxu0 %v749_v49  ;;  %614 = vmatpush.msrb.mxu1 %v750_v50 }
  0x26   :  { %744 = vmatmul.msk.f32.vlgmr.msra.gmra.mxu0 %vm33_vm1, %v825_v9  ;;  %746 = vmatmul.msk.f32.vlgmr.msra.gmra.mxu1 %vm33_vm1, %v825_v9 }
  0x27   :  { %760 = vmatmul.msk.f32.vlgmr.msra.gmra.mxu2 %vm33_vm1, %v825_v9  ;;  %762 = vmatmul.msk.f32.vlgmr.msra.gmra.mxu3 %vm33_vm1, %v825_v9 }
  0x2e   :  { %764 = vmatmul.msk.f32.vlgmr.msrb.gmra.mxu0 %vm33_vm1, %v825_v9  ;;  %766 = vmatmul.msk.f32.vlgmr.msrb.gmra.mxu1 %vm33_vm1, %v825_v9 }
  0x2f   :  { %768 = vmatmul.msk.f32.vlgmr.msrb.gmra.mxu2 %vm33_vm1, %v825_v9  ;;  %770 = vmatmul.msk.f32.vlgmr.msrb.gmra.mxu3 %vm33_vm1, %v825_v9 }
  0x83   :  { %v73_v51 = vpop.f32.mrf.mxu0  ;;  %v93_v52 = vpop.f32.mrf.mxu1 }
  0x85   :  { %v1018_v1 = vpop.permute.xlu0 %30 }
  0x86   :  { %v74_v8 = vadd.f32 %v73_v51, %v1018_v1  ;;  %v94_v9 = vadd.f32 %v93_v52, %v1018_v1 }
  0x88   :  { %v176_v22 = vmax.f32 %v74_v8, 0.0  ;;  %v177_v23 = vmax.f32 %v94_v9, 0.0 }
  0x8a   :  { %v113_v53 = vpop.f32.mrf.mxu2  ;;  %v133_v54 = vpop.f32.mrf.mxu3 }
  0x8b   :  { %v153_v55 = vpop.f32.mrf.mxu0  ;;  %v173_v56 = vpop.f32.mrf.mxu1  ;;  %v114_v12 = vadd.f32 %v113_v53, %v1018_v1  ;;  %v134_v13 = vadd.f32 %v133_v54, %v1018_v1 }
  0x8c   :  { %v154_v28 = vadd.f32 %v153_v55, %v1018_v1  ;;  %v174_v29 = vadd.f32 %v173_v56, %v1018_v1 }
  0x8d   :  { %v178_v24 = vmax.f32 %v114_v12, 0.0  ;;  %v179_v25 = vmax.f32 %v134_v13, 0.0 }
  0x92   :  { %v230_v57 = vpop.f32.mrf.mxu2  ;;  %v250_v58 = vpop.f32.mrf.mxu3 }
  0x93   :  { %v270_v59 = vpop.f32.mrf.mxu0  ;;  %v290_v60 = vpop.f32.mrf.mxu1  ;;  %v231_v2 = vadd.f32 %v230_v57, %v1018_v1  ;;  %v251_v3 = vadd.f32 %v250_v58, %v1018_v1 }
  0x94   :  { %v271_v4 = vadd.f32 %v270_v59, %v1018_v1  ;;  %v291_v5 = vadd.f32 %v290_v60, %v1018_v1  ;;  %v180_v60 = vmax.f32 %v154_v28, 0.0 }
  0x95   :  { %v333_v16 = vmax.f32 %v231_v2, 0.0  ;;  %v334_v17 = vmax.f32 %v251_v3, 0.0 }
  0x96   :  { %v335_v18 = vmax.f32 %v271_v4, 0.0  ;;  %v336_v19 = vmax.f32 %v291_v5, 0.0 }
  0x97   :  { %v339_v30 = vadd.f32 %v333_v16, %v176_v22  ;;  %v340_v31 = vadd.f32 %v334_v17, %v177_v23 }
  0x98   :  { %v341_v32 = vadd.f32 %v335_v18, %v178_v24  ;;  %v342_v33 = vadd.f32 %v336_v19, %v179_v25 }
  0x9a   :  { %v310_v61 = vpop.f32.mrf.mxu2  ;;  %v330_v62 = vpop.f32.mrf.mxu3 }
  0x9b   :  { %v393_v63 = vpop.f32.mrf.mxu0  ;;  %v413_v0 = vpop.f32.mrf.mxu1  ;;  %v311_v38 = vadd.f32 %v310_v61, %v1018_v1  ;;  %v331_v39 = vadd.f32 %v330_v62, %v1018_v1  ;;  %v181_v61 = vmax.f32 %v174_v29, 0.0 }
  0x9c   :  { %v394_v14 = vadd.f32 %v393_v63, %v1018_v1  ;;  %v414_v15 = vadd.f32 %v413_v0, %v1018_v1 }
  0x9d   :  { %v337_v56 = vmax.f32 %v311_v38, 0.0  ;;  %v338_v57 = vmax.f32 %v331_v39, 0.0 }
  0x9e   :  { %v496_v26 = vmax.f32 %v394_v14, 0.0  ;;  %v497_v27 = vmax.f32 %v414_v15, 0.0 }
  0x9f   :  { %v343_v9 = vadd.f32 %v337_v56, %v180_v60 }
  0xa0   :  { %v502_v44 = vadd.f32 %v496_v26, %v339_v30  ;;  %v503_v45 = vadd.f32 %v497_v27, %v340_v31 }
  0xa2   :  { %v433_v6 = vpop.f32.mrf.mxu2  ;;  %v453_v7 = vpop.f32.mrf.mxu3 }
  0xa3   :  { %v473_v10 = vpop.f32.mrf.mxu0  ;;  %v493_v11 = vpop.f32.mrf.mxu1  ;;  %v434_v20 = vadd.f32 %v433_v6, %v1018_v1  ;;  %v454_v21 = vadd.f32 %v453_v7, %v1018_v1 }
  0xa4   :  { %v474_v48 = vadd.f32 %v473_v10, %v1018_v1  ;;  %v494_v49 = vadd.f32 %v493_v11, %v1018_v1  ;;  %v344_v10 = vadd.f32 %v338_v57, %v181_v61 }
  0xa5   :  { %v498_v34 = vmax.f32 %v434_v20, 0.0  ;;  %v499_v35 = vmax.f32 %v454_v21, 0.0 }
  0xa6   :  { %v500_v0 = vmax.f32 %v474_v48, 0.0  ;;  %v501_v2 = vmax.f32 %v494_v49, 0.0 }
  0xa7   :  { %v504_v52 = vadd.f32 %v498_v34, %v341_v32  ;;  %v505_v53 = vadd.f32 %v499_v35, %v342_v33 }
  0xa8   :  { %v506_v13 = vadd.f32 %v500_v0, %v343_v9  ;;  %v507_v14 = vadd.f32 %v501_v2, %v344_v10 }
  0xaa   :  { %v556_v36 = vpop.f32.mrf.mxu2  ;;  %v576_v37 = vpop.f32.mrf.mxu3 }
  0xab   :  { %v557_v40 = vadd.f32 %v556_v36, %v1018_v1  ;;  %v577_v41 = vadd.f32 %v576_v37, %v1018_v1  ;;  %v596_v42 = vpop.f32.mrf.mxu0  ;;  %v616_v43 = vpop.f32.mrf.mxu1 }
  0xac   :  { %v597_v46 = vadd.f32 %v596_v42, %v1018_v1  ;;  %v617_v47 = vadd.f32 %v616_v43, %v1018_v1 }
  0xad   :  { %v659_v50 = vmax.f32 %v557_v40, 0.0  ;;  %v660_v51 = vmax.f32 %v577_v41, 0.0 }
  0xae   :  { %v661_v54 = vmax.f32 %v597_v46, 0.0  ;;  %v662_v55 = vmax.f32 %v617_v47, 0.0 }
  0xaf   :  { %v665_v58 = vadd.f32 %v659_v50, %v502_v44  ;;  %v666_v59 = vadd.f32 %v660_v51, %v503_v45 }
  0xb0   :  { %v667_v62 = vadd.f32 %v661_v54, %v504_v52  ;;  %v668_v63 = vadd.f32 %v662_v55, %v505_v53 }
  0xb1   :  { %v671_v3 = vmul.f32 0.25, %v665_v58  ;;  %v672_v4 = vmul.f32 0.25, %v666_v59 }
  0xb2   :  { %v673_v5 = vmul.f32 0.25, %v667_v62  ;;  %v674_v6 = vmul.f32 0.25, %v668_v63  ;;  %v636_v7 = vpop.f32.mrf.mxu2  ;;  %v656_v8 = vpop.f32.mrf.mxu3 }
  0xb3   :  { %677 = vst [vmem:[%s1065_s3] sm:$0xff] %v671_v3  ;;  %v637_v11 = vadd.f32 %v636_v7, %v1018_v1  ;;  %v657_v12 = vadd.f32 %v656_v8, %v1018_v1 }
  0xb4   :  { %678 = vst [vmem:[%s1065_s3 + $0x8] sm:$0xff] %v672_v4 }
  0xb5   :  { %679 = vst [vmem:[%s1065_s3 + $0x10] sm:$0xff] %v673_v5  ;;  %v663_v15 = vmax.f32 %v637_v11, 0.0  ;;  %v664_v16 = vmax.f32 %v657_v12, 0.0 }
  0xb6   :  { %680 = vst [vmem:[%s1065_s3 + $0x18] sm:$0xff] %v674_v6 }
  0xb7   :  { %v669_v17 = vadd.f32 %v663_v15, %v506_v13  ;;  %v670_v18 = vadd.f32 %v664_v16, %v507_v14 }
  0xb9   :  { %v675_v19 = vmul.f32 0.25, %v669_v17  ;;  %v676_v1 = vmul.f32 0.25, %v670_v18 }
  0xbb   :  { %681 = vst [vmem:[%s1065_s3 + $0x20] sm:$0xff] %v675_v19 }
  0xbc   :  { %682 = vst [vmem:[%s1065_s3 + $0x28] sm:$0xff] %v676_v1 }

// kernel: ae_forward.9
= control target key start
LH: loop header
LB: loop body
LE: loop exit
PB: predicated region body
PF: predicated region fallthrough
CT: control target
= control target key end

     0   :  { %v190_v3 = vmov 0   ;;  %vm30_vm0 = vcmask 588800   ;;  %s328_s1 = inlined_call_operand.vmem [shape: f32[4,72,128], index: 1, kind: input, shape index: {}]   ;;  %s329_s0 = inlined_call_operand.vmem [shape: f32[8,72], index: 0, kind: input, shape index: {}]   ;;  %s330_s2 = inlined_call_operand.vmem [shape: f32[8,1], index: 2, kind: input, shape index: {}]   ;;  %s331_s3 = inlined_call_operand.vmem [shape: f32[8,128], index: 3, kind: output, shape index: {}]  }
   0x1   :  { %v176_v0 = vld [vmem:[%s328_s1 + $0xd0] sm:$0xff]  ;;  %v186_v1 = vld [vmem:[%s328_s1 + $0x118] sm:$0xff]  ;;  %v175_v2 = vld [vmem:[%s328_s1 + $0xc8] sm:$0xff]  ;;  %189 = vset.pattern.permute.xlu0 %v190_v3 }
   0x2   :  { %104 = vmatpush.msra.mxu2 %v176_v0  ;;  %136 = vmatpush.msra.mxu3 %v186_v1  ;;  %v185_v4 = vld [vmem:[%s328_s1 + $0x110] sm:$0xff]  ;;  %v24_v5 = vld [vmem:[%s328_s1 + $0x40] sm:$0xff]  ;;  %v166_v6 = vld [vmem:[%s328_s1 + $0x88] sm:$0xff] }
   0x3   :  { %41 = vmatpush.msra.mxu0 %v24_v5  ;;  %72 = vmatpush.msra.mxu1 %v166_v6  ;;  %v174_v7 = vld [vmem:[%s328_s1 + $0xc0] sm:$0xff]  ;;  %v184_v8 = vld [vmem:[%s328_s1 + $0x108] sm:$0xff]  ;;  %v23_v9 = vld [vmem:[%s328_s1 + $0x38] sm:$0xff] }
   0x4   :  { %105 = vmatpush.msra.mxu2 %v175_v2  ;;  %137 = vmatpush.msra.mxu3 %v185_v4  ;;  %v165_v10 = vld [vmem:[%s328_s1 + $0x80] sm:$0xff]  ;;  %v173_v11 = vld [vmem:[%s328_s1 + $0xb8] sm:$0xff]  ;;  %v22_v13 = vld [vmem:[%s328_s1 + $0x30] sm:$0xff] }
   0x5   :  { %42 = vmatpush.msra.mxu0 %v23_v9  ;;  %73 = vmatpush.msra.mxu1 %v165_v10  ;;  %v183_v12 = vld [vmem:[%s328_s1 + $0x100] sm:$0xff]  ;;  %v164_v14 = vld [vmem:[%s328_s1 + $0x78] sm:$0xff]  ;;  %v21_v15 = vld [vmem:[%s328_s1 + $0x28] sm:$0xff] }
   0x6   :  { %106 = vmatpush.msra.mxu2 %v174_v7  ;;  %138 = vmatpush.msra.mxu3 %v184_v8  ;;  %v163_v16 = vld [vmem:[%s328_s1 + $0x70] sm:$0xff]  ;;  %v182_v18 = vld [vmem:[%s328_s1 + $0xf8] sm:$0xff]  ;;  %v20_v19 = vld [vmem:[%s328_s1 + $0x20] sm:$0xff] }
   0x7   :  { %43 = vmatpush.msra.mxu0 %v22_v13  ;;  %74 = vmatpush.msra.mxu1 %v164_v14  ;;  %v172_v17 = vld [vmem:[%s328_s1 + $0xb0] sm:$0xff]  ;;  %v162_v20 = vld [vmem:[%s328_s1 + $0x68] sm:$0xff]  ;;  %v19_v23 = vld [vmem:[%s328_s1 + $0x18] sm:$0xff] }
   0x8   :  { %107 = vmatpush.msra.mxu2 %v173_v11  ;;  %139 = vmatpush.msra.mxu3 %v183_v12  ;;  %v171_v21 = vld [vmem:[%s328_s1 + $0xa8] sm:$0xff]  ;;  %v181_v22 = vld [vmem:[%s328_s1 + $0xf0] sm:$0xff]  ;;  %v161_v24 = vld [vmem:[%s328_s1 + $0x60] sm:$0xff] }
   0x9   :  { %44 = vmatpush.msra.mxu0 %v21_v15  ;;  %75 = vmatpush.msra.mxu1 %v163_v16  ;;  %v170_v25 = vld [vmem:[%s328_s1 + $0xa0] sm:$0xff]  ;;  %v180_v26 = vld [vmem:[%s328_s1 + $0xe8] sm:$0xff]  ;;  %v18_v27 = vld [vmem:[%s328_s1 + $0x10] sm:$0xff] }
   0xa   :  { %108 = vmatpush.msra.mxu2 %v172_v17  ;;  %140 = vmatpush.msra.mxu3 %v182_v18  ;;  %v160_v28 = vld [vmem:[%s328_s1 + $0x58] sm:$0xff]  ;;  %v179_v30 = vld [vmem:[%s328_s1 + $0xe0] sm:$0xff]  ;;  %v17_v31 = vld [vmem:[%s328_s1 + $0x8] sm:$0xff] }
   0xb   :  { %45 = vmatpush.msra.mxu0 %v20_v19  ;;  %76 = vmatpush.msra.mxu1 %v162_v20  ;;  %v169_v29 = vld [vmem:[%s328_s1 + $0x98] sm:$0xff]  ;;  %v159_v32 = vld [vmem:[%s328_s1 + $0x50] sm:$0xff]  ;;  %v14_v35 = vld [vmem:[%s329_s0] sm:$0xff] }
   0xc   :  { %109 = vmatpush.msra.mxu2 %v171_v21  ;;  %141 = vmatpush.msra.mxu3 %v181_v22  ;;  %v168_v33 = vld [vmem:[%s328_s1 + $0x90] sm:$0xff]  ;;  %v178_v34 = vld [vmem:[%s328_s1 + $0xd8] sm:$0xff]  ;;  %v16_v36 = vld [vmem:[%s328_s1] sm:$0xff] }
   0xd   :  { %46 = vmatpush.msra.mxu0 %v19_v23  ;;  %77 = vmatpush.msra.mxu1 %v161_v24  ;;  %v158_v37 = vld [vmem:[%s328_s1 + $0x48] sm:$0xff]  ;;  %v15_v38 = vld [vmem:[%s330_s2] sm:$0xff] }
   0xe   :  { %110 = vmatpush.msra.mxu2 %v170_v25  ;;  %142 = vmatpush.msra.mxu3 %v180_v26 }
   0xf   :  { %47 = vmatpush.msra.mxu0 %v18_v27  ;;  %78 = vmatpush.msra.mxu1 %v160_v28 }
  0x10   :  { %111 = vmatpush.msra.mxu2 %v169_v29  ;;  %143 = vmatpush.msra.mxu3 %v179_v30 }
  0x11   :  { %48 = vmatpush.msra.mxu0 %v17_v31  ;;  %79 = vmatpush.msra.mxu1 %v159_v32 }
  0x12   :  { %112 = vmatpush.msra.mxu2 %v168_v33  ;;  %144 = vmatpush.msra.mxu3 %v178_v34 }
  0x13   :  { %177 = vmatmul.msk.f32.vlgmr.msra.gmra.mxu2 %vm30_vm0, %v14_v35  ;;  %187 = vmatmul.msk.f32.vlgmr.msra.gmra.mxu3 %vm30_vm0, %v14_v35 }
  0x14   :  { %49 = vmatpush.msra.mxu0 %v16_v36  ;;  %80 = vmatpush.msra.mxu1 %v158_v37 }
  0x15   :  { %157 = vmatmul.msk.f32.vlgmr.msra.gmra.mxu0 %vm30_vm0, %v14_v35  ;;  %167 = vmatmul.msk.f32.vlgmr.msra.gmra.mxu1 %vm30_vm0, %v14_v35 }
  0x16   :  { %27 = vperm.xlu0 %189, %v15_v38  }
  0x88   :  { %v28_v39 = vpop.permute.xlu0 %27 }
  0x92   :  { %v51_v40 = vpop.f32.mrf.mxu0  ;;  %v82_v41 = vpop.f32.mrf.mxu1 }
  0x93   :  { %v52_v42 = vadd.f32 %v51_v40, %v28_v39  ;;  %v83_v43 = vadd.f32 %v82_v41, %v28_v39 }
  0x95   :  { %v54_v44 = vmax.f32 %v52_v42, 0.0  ;;  %v85_v45 = vmax.f32 %v83_v43, 0.0 }
  0x96   :  { %v114_v46 = vpop.f32.mrf.mxu2  ;;  %v146_v47 = vpop.f32.mrf.mxu3 }
  0x97   :  { %v86_v48 = vadd.f32 %v85_v45, %v54_v44  ;;  %v115_v49 = vadd.f32 %v114_v46, %v28_v39  ;;  %v147_v50 = vadd.f32 %v146_v47, %v28_v39 }
  0x99   :  { %v117_v51 = vmax.f32 %v115_v49, 0.0  ;;  %v149_v53 = vmax.f32 %v147_v50, 0.0 }
  0x9b   :  { %v118_v52 = vadd.f32 %v117_v51, %v86_v48 }
  0x9d   :  { %v150_v54 = vadd.f32 %v149_v53, %v118_v52 }
  0x9f   :  { %v151_v55 = vmul.f32 0.25, %v150_v54 }
  0xa1   :  { %152 = vst [vmem:[%s331_s3] sm:$0xff] %v151_v55 }

// kernel: ae_forward.10
= control target key start
LH: loop header
LB: loop body
LE: loop exit
PB: predicated region body
PF: predicated region fallthrough
CT: control target
= control target key end

     0   :  { %v190_v3 = vmov 0   ;;  %vm30_vm0 = vcmask 588800   ;;  %s328_s1 = inlined_call_operand.vmem [shape: f32[4,72,128], index: 1, kind: input, shape index: {}]   ;;  %s329_s0 = inlined_call_operand.vmem [shape: f32[4,72], index: 0, kind: input, shape index: {}]   ;;  %s330_s2 = inlined_call_operand.vmem [shape: f32[4,1], index: 2, kind: input, shape index: {}]   ;;  %s331_s3 = inlined_call_operand.vmem [shape: f32[4,128], index: 3, kind: output, shape index: {}]  }
   0x1   :  { %v176_v0 = vld [vmem:[%s328_s1 + $0xd0] sm:$0xff]  ;;  %v186_v1 = vld [vmem:[%s328_s1 + $0x118] sm:$0xff]  ;;  %v175_v2 = vld [vmem:[%s328_s1 + $0xc8] sm:$0xff]  ;;  %189 = vset.pattern.permute.xlu0 %v190_v3 }
   0x2   :  { %104 = vmatpush.msra.mxu2 %v176_v0  ;;  %136 = vmatpush.msra.mxu3 %v186_v1  ;;  %v185_v4 = vld [vmem:[%s328_s1 + $0x110] sm:$0xff]  ;;  %v24_v5 = vld [vmem:[%s328_s1 + $0x40] sm:$0xff]  ;;  %v166_v6 = vld [vmem:[%s328_s1 + $0x88] sm:$0xff] }
   0x3   :  { %41 = vmatpush.msra.mxu0 %v24_v5  ;;  %72 = vmatpush.msra.mxu1 %v166_v6  ;;  %v174_v7 = vld [vmem:[%s328_s1 + $0xc0] sm:$0xff]  ;;  %v184_v8 = vld [vmem:[%s328_s1 + $0x108] sm:$0xff]  ;;  %v23_v9 = vld [vmem:[%s328_s1 + $0x38] sm:$0xff] }
   0x4   :  { %105 = vmatpush.msra.mxu2 %v175_v2  ;;  %137 = vmatpush.msra.mxu3 %v185_v4  ;;  %v165_v10 = vld [vmem:[%s328_s1 + $0x80] sm:$0xff]  ;;  %v173_v11 = vld [vmem:[%s328_s1 + $0xb8] sm:$0xff]  ;;  %v22_v13 = vld [vmem:[%s328_s1 + $0x30] sm:$0xff] }
   0x5   :  { %42 = vmatpush.msra.mxu0 %v23_v9  ;;  %73 = vmatpush.msra.mxu1 %v165_v10  ;;  %v183_v12 = vld [vmem:[%s328_s1 + $0x100] sm:$0xff]  ;;  %v164_v14 = vld [vmem:[%s328_s1 + $0x78] sm:$0xff]  ;;  %v21_v15 = vld [vmem:[%s328_s1 + $0x28] sm:$0xff] }
   0x6   :  { %106 = vmatpush.msra.mxu2 %v174_v7  ;;  %138 = vmatpush.msra.mxu3 %v184_v8  ;;  %v163_v16 = vld [vmem:[%s328_s1 + $0x70] sm:$0xff]  ;;  %v182_v18 = vld [vmem:[%s328_s1 + $0xf8] sm:$0xff]  ;;  %v20_v19 = vld [vmem:[%s328_s1 + $0x20] sm:$0xff] }
   0x7   :  { %43 = vmatpush.msra.mxu0 %v22_v13  ;;  %74 = vmatpush.msra.mxu1 %v164_v14  ;;  %v172_v17 = vld [vmem:[%s328_s1 + $0xb0] sm:$0xff]  ;;  %v162_v20 = vld [vmem:[%s328_s1 + $0x68] sm:$0xff]  ;;  %v19_v23 = vld [vmem:[%s328_s1 + $0x18] sm:$0xff] }
   0x8   :  { %107 = vmatpush.msra.mxu2 %v173_v11  ;;  %139 = vmatpush.msra.mxu3 %v183_v12  ;;  %v171_v21 = vld [vmem:[%s328_s1 + $0xa8] sm:$0xff]  ;;  %v181_v22 = vld [vmem:[%s328_s1 + $0xf0] sm:$0xff]  ;;  %v161_v24 = vld [vmem:[%s328_s1 + $0x60] sm:$0xff] }
   0x9   :  { %44 = vmatpush.msra.mxu0 %v21_v15  ;;  %75 = vmatpush.msra.mxu1 %v163_v16  ;;  %v170_v25 = vld [vmem:[%s328_s1 + $0xa0] sm:$0xff]  ;;  %v180_v26 = vld [vmem:[%s328_s1 + $0xe8] sm:$0xff]  ;;  %v18_v27 = vld [vmem:[%s328_s1 + $0x10] sm:$0xff] }
   0xa   :  { %108 = vmatpush.msra.mxu2 %v172_v17  ;;  %140 = vmatpush.msra.mxu3 %v182_v18  ;;  %v160_v28 = vld [vmem:[%s328_s1 + $0x58] sm:$0xff]  ;;  %v179_v30 = vld [vmem:[%s328_s1 + $0xe0] sm:$0xff]  ;;  %v17_v31 = vld [vmem:[%s328_s1 + $0x8] sm:$0xff] }
   0xb   :  { %45 = vmatpush.msra.mxu0 %v20_v19  ;;  %76 = vmatpush.msra.mxu1 %v162_v20  ;;  %v169_v29 = vld [vmem:[%s328_s1 + $0x98] sm:$0xff]  ;;  %v159_v32 = vld [vmem:[%s328_s1 + $0x50] sm:$0xff]  ;;  %v14_v35 = vld [vmem:[%s329_s0] sm:$0xf] }
   0xc   :  { %109 = vmatpush.msra.mxu2 %v171_v21  ;;  %141 = vmatpush.msra.mxu3 %v181_v22  ;;  %v168_v33 = vld [vmem:[%s328_s1 + $0x90] sm:$0xff]  ;;  %v178_v34 = vld [vmem:[%s328_s1 + $0xd8] sm:$0xff]  ;;  %v16_v36 = vld [vmem:[%s328_s1] sm:$0xff] }
   0xd   :  { %46 = vmatpush.msra.mxu0 %v19_v23  ;;  %77 = vmatpush.msra.mxu1 %v161_v24  ;;  %v158_v37 = vld [vmem:[%s328_s1 + $0x48] sm:$0xff]  ;;  %v15_v38 = vld [vmem:[%s330_s2] sm:$0xf] }
   0xe   :  { %110 = vmatpush.msra.mxu2 %v170_v25  ;;  %142 = vmatpush.msra.mxu3 %v180_v26 }
   0xf   :  { %47 = vmatpush.msra.mxu0 %v18_v27  ;;  %78 = vmatpush.msra.mxu1 %v160_v28 }
  0x10   :  { %111 = vmatpush.msra.mxu2 %v169_v29  ;;  %143 = vmatpush.msra.mxu3 %v179_v30 }
  0x11   :  { %48 = vmatpush.msra.mxu0 %v17_v31  ;;  %79 = vmatpush.msra.mxu1 %v159_v32 }
  0x12   :  { %112 = vmatpush.msra.mxu2 %v168_v33  ;;  %144 = vmatpush.msra.mxu3 %v178_v34 }
  0x13   :  { %177 = vmatmul.msk.f32.vlgmr.msra.gmra.mxu2 %vm30_vm0, %v14_v35  ;;  %187 = vmatmul.msk.f32.vlgmr.msra.gmra.mxu3 %vm30_vm0, %v14_v35 }
  0x14   :  { %49 = vmatpush.msra.mxu0 %v16_v36  ;;  %80 = vmatpush.msra.mxu1 %v158_v37 }
  0x15   :  { %157 = vmatmul.msk.f32.vlgmr.msra.gmra.mxu0 %vm30_vm0, %v14_v35  ;;  %167 = vmatmul.msk.f32.vlgmr.msra.gmra.mxu1 %vm30_vm0, %v14_v35 }
  0x16   :  { %27 = vperm.xlu0 %189, %v15_v38  }
  0x88   :  { %v28_v39 = vpop.permute.xlu0 %27 }
  0x92   :  { %v51_v40 = vpop.f32.mrf.mxu0  ;;  %v82_v41 = vpop.f32.mrf.mxu1 }
  0x93   :  { %v52_v42 = vadd.f32 %v51_v40, %v28_v39  ;;  %v83_v43 = vadd.f32 %v82_v41, %v28_v39 }
  0x95   :  { %v54_v44 = vmax.f32 %v52_v42, 0.0  ;;  %v85_v45 = vmax.f32 %v83_v43, 0.0 }
  0x96   :  { %v114_v46 = vpop.f32.mrf.mxu2  ;;  %v146_v47 = vpop.f32.mrf.mxu3 }
  0x97   :  { %v86_v48 = vadd.f32 %v85_v45, %v54_v44  ;;  %v115_v49 = vadd.f32 %v114_v46, %v28_v39  ;;  %v147_v50 = vadd.f32 %v146_v47, %v28_v39 }
  0x99   :  { %v117_v51 = vmax.f32 %v115_v49, 0.0  ;;  %v149_v53 = vmax.f32 %v147_v50, 0.0 }
  0x9b   :  { %v118_v52 = vadd.f32 %v117_v51, %v86_v48 }
  0x9d   :  { %v150_v54 = vadd.f32 %v149_v53, %v118_v52 }
  0x9f   :  { %v151_v55 = vmul.f32 0.25, %v150_v54 }
  0xa1   :  { %152 = vst [vmem:[%s331_s3] sm:$0xf] %v151_v55 }

// kernel: ae_forward.11
= control target key start
LH: loop header
LB: loop body
LE: loop exit
PB: predicated region body
PF: predicated region fallthrough
CT: control target
= control target key end

     0   :  { %vm52_vm0 = vcmask 195584   ;;  %vm85_vm1 = vcmask 261120   ;;  %vm116_vm2 = vcmask 130048   ;;  %vm149_vm3 = vcmask 1041408   ;;  %s401_s1 = inlined_call_operand.vmem [shape: f32[24,32], index: 1, kind: input, shape index: {}]   ;;  %s402_s3 = inlined_call_operand.vmem [shape: f32[32,16], index: 3, kind: input, shape index: {}]   ;;  %s403_s0 = inlined_call_operand.vmem [shape: f32[2,24], index: 0, kind: input, shape index: {}]   ;;  %s404_s2 = inlined_call_operand.vmem [shape: f32[1,32], index: 2, kind: input, shape index: {}]   ;;  %s405_s4 = inlined_call_operand.vmem [shape: f32[1,16], index: 4, kind: input, shape index: {}]   ;;  %s406_s6 = inlined_call_operand.vmem [shape: f32[1,2], index: 6, kind: input, shape index: {}]   ;;  %s407_s5 = inlined_call_operand.vmem [shape: f32[16,2], index: 5, kind: input, shape index: {}]   ;;  %s408_s8 = inlined_call_operand.vmem [shape: f32[1,16], index: 8, kind: input, shape index: {}]   ;;  %s409_s7 = inlined_call_operand.vmem [shape: f32[2,16], index: 7, kind: input, shape index: {}]   ;;  %s410_s9 = inlined_call_operand.vmem [shape: f32[16,32], index: 9, kind: input, shape index: {}]   ;;  %s411_s10 = inlined_call_operand.vmem [shape: f32[1,32], index: 10, kind: input, shape index: {}]   ;;  %s412_s11 = inlined_call_operand.vmem [shape: f32[32,24], index: 11, kind: input, shape index: {}]   ;;  %s413_s12 = inlined_call_operand.vmem [shape: f32[1,24], index: 12, kind: input, shape index: {}]   ;;  %s414_s13 = inlined_call_operand.vmem [shape: f32[2,24], index: 13, kind: output, shape index: {}]  }
   0x1   :  { %v47_v0 = vld [vmem:[%s401_s1 + $0x10] sm:$0xff]  ;;  %v46_v1 = vld [vmem:[%s401_s1 + $0x8] sm:$0xff]  ;;  %v80_v2 = vld [vmem:[%s402_s3 + $0x18] sm:$0xff]  ;;  %vm145_vm4 = vcmask 15360   ;;  %vm236_vm5 = vcmask 189440  }
   0x2   :  { %69 = vmatpush.msra.mxu0 %v47_v0  ;;  %v45_v3 = vld [vmem:[%s401_s1] sm:$0xff]  ;;  %101 = vmatpush.msra.mxu1 %v80_v2  ;;  %v79_v5 = vld [vmem:[%s402_s3 + $0x10] sm:$0xff]  ;;  %v78_v6 = vld [vmem:[%s402_s3 + $0x8] sm:$0xff] }
   0x3   :  { %v44_v4 = vld [vmem:[%s403_s0] sm:$0x3]  ;;  %v111_v12 = vld [vmem:[%s407_s5 + $0x8] sm:$0xff]  ;;  %v207_v24 = vld [vmem:[%s412_s11 + $0x18] sm:$0xff] }
   0x4   :  { %70 = vmatpush.msra.mxu0 %v46_v1  ;;  %102 = vmatpush.msra.mxu1 %v79_v5  ;;  %v77_v7 = vld [vmem:[%s402_s3] sm:$0xff]  ;;  %v175_v19 = vld [vmem:[%s410_s9 + $0x8] sm:$0xff]  ;;  %v206_v25 = vld [vmem:[%s412_s11 + $0x10] sm:$0xff] }
   0x5   :  { %v249_v8 = vld [vmem:[%s404_s2] ss:$0 sm:$0xff]  ;;  %134 = vmatpush.msra.mxu2 %v111_v12  ;;  %v205_v30 = vld [vmem:[%s412_s11 + $0x8] sm:$0xff] }
   0x6   :  { %71 = vmatpush.msra.mxu0 %v45_v3  ;;  %103 = vmatpush.msra.mxu1 %v78_v6  ;;  %v110_v13 = vld [vmem:[%s407_s5] sm:$0xff] }
   0x7   :  { %242 = vmatmul.msk.f32.vlgmr.msra.gmra.mxu0 %vm52_vm0, %v44_v4  ;;  %135 = vmatpush.msra.mxu2 %v110_v13  ;;  %v250_v14 = vld [vmem:[%s405_s4] ss:$0 sm:$0xff] }
   0x8   :  { %104 = vmatpush.msra.mxu1 %v77_v7  ;;  %v140_v18 = vld [vmem:[%s409_s7] sm:$0x3] }
   0x9   :  { %245 = vmatpush.msk.msra.mxu3 %vm149_vm3, %v140_v18  ;;  %v251_v20 = vld [vmem:[%s406_s6] ss:$0 sm:$0xff]  ;;  %227 = vmatpush.msrb.mxu2 %v207_v24 }
   0xa   :  { %v174_v23 = vld [vmem:[%s410_s9] sm:$0xff] }
   0xb   :  { %197 = vmatpush.msrb.mxu3 %v175_v19  ;;  %228 = vmatpush.msrb.mxu2 %v206_v25  ;;  %v252_v26 = vld [vmem:[%s408_s8] ss:$0 sm:$0xff] }
   0xc   :  { %v204_v31 = vld [vmem:[%s412_s11] sm:$0xff] }
   0xd   :  { %198 = vmatpush.msrb.mxu3 %v174_v23  ;;  %229 = vmatpush.msrb.mxu2 %v205_v30  ;;  %v253_v32 = vld [vmem:[%s411_s10] ss:$0 sm:$0xff] }
   0xe   :  { %v254_v36 = vld [vmem:[%s413_s12] ss:$0 sm:$0xff] }
   0xf   :  { %230 = vmatpush.msrb.mxu2 %v204_v31 }
  0x84   :  { %v73_v9 = vpop.f32.mrf.mxu0 }
  0x85   :  { %v74_v10 = vadd.f32 %v249_v8, %v73_v9 }
  0x87   :  { %v76_v11 = vmax.f32 %v74_v10, 0.0 }
  0x89   :  { %243 = vmatmul.msk.f32.vlgmr.msra.gmra.mxu1 %vm85_vm1, %v76_v11 }
 0x106   :  { %v106_v15 = vpop.f32.mrf.mxu1 }
 0x107   :  { %v107_v16 = vadd.f32 %v250_v14, %v106_v15 }
 0x109   :  { %v109_v17 = vmax.f32 %v107_v16, 0.0 }
 0x10b   :  { %244 = vmatmul.msk.f32.vlgmr.msra.gmra.mxu2 %vm116_vm2, %v109_v17 }
 0x18e   :  { %v137_v21 = vpop.f32.mrf.mxu2 }
 0x18f   :  { %v138_v22 = vadd.f32 %v251_v20, %v137_v21 }
 0x191   :  { %246 = vmatmul.msk.f32.vlgmr.msra.gmra.mxu3 %vm145_vm4, %v138_v22 }
 0x214   :  { %v170_v27 = vpop.f32.mrf.mxu3 }
 0x215   :  { %v171_v28 = vadd.f32 %v252_v26, %v170_v27 }
 0x217   :  { %v173_v29 = vmax.f32 %v171_v28, 0.0 }
 0x219   :  { %247 = vmatmul.msk.f32.vlgmr.msrb.gmra.mxu3 %vm116_vm2, %v173_v29 }
 0x29c   :  { %v200_v33 = vpop.f32.mrf.mxu3 }
 0x29d   :  { %v201_v34 = vadd.f32 %v253_v32, %v200_v33 }
 0x29f   :  { %v203_v35 = vmax.f32 %v201_v34, 0.0 }
 0x2a1   :  { %248 = vmatmul.msk.f32.vlgmr.msrb.gmra.mxu2 %vm85_vm1, %v203_v35 }
 0x324   :  { %v232_v37 = vpop.f32.mrf.mxu2 }
 0x325   :  { %v233_v38 = vadd.f32 %v254_v36, %v232_v37 }
 0x327   :  { %v235_v39 = vmax.f32 %v233_v38, 0.0 }
 0x329   :  { %237 = vst.msk [vmem:[%s414_s13] sm:$0x3] %vm236_vm5, %v235_v39 }

// kernel: ae_forward.12
= control target key start
LH: loop header
LB: loop body
LE: loop exit
PB: predicated region body
PF: predicated region fallthrough
CT: control target
= control target key end

     0   :  { %vm30_vm0 = vcmask 1043456   ;;  %v64_v2 = vmov 0   ;;  %vm26_vm1 = vcmask 293888   ;;  %s109_s1 = inlined_call_operand.vmem [shape: f32[36,128], index: 1, kind: input, shape index: {}]   ;;  %s110_s2 = inlined_call_operand.vmem [shape: f32[8,1], index: 2, kind: input, shape index: {}]   ;;  %s111_s0 = inlined_call_operand.vmem [shape: f32[8,36], index: 0, kind: input, shape index: {}]   ;;  %s112_s3 = inlined_call_operand.vmem [shape: f32[8,128], index: 3, kind: output, shape index: {}]  }
   0x1   :  { %v19_v0 = vld [vmem:[%s109_s1 + $0x20] sm:$0xf]  ;;  %v18_v1 = vld [vmem:[%s109_s1 + $0x18] sm:$0xff]  ;;  %63 = vset.pattern.permute.xlu0 %v64_v2  ;;  %v17_v3 = vld [vmem:[%s109_s1 + $0x10] sm:$0xff] }
   0x2   :  { %60 = vmatpush.msk.msra.mxu0 %vm30_vm0, %v19_v0  ;;  %v20_v4 = vld [vmem:[%s110_s2] sm:$0xff]  ;;  %v16_v5 = vld [vmem:[%s109_s1 + $0x8] sm:$0xff] }
   0x3   :  { %23 = vperm.xlu0 %63, %v20_v4   ;;  %v15_v6 = vld [vmem:[%s109_s1] sm:$0xff] }
   0x4   :  { %46 = vmatpush.msra.mxu0 %v18_v1  ;;  %v14_v7 = vld [vmem:[%s111_s0] sm:$0xff] }
   0x6   :  { %47 = vmatpush.msra.mxu0 %v17_v3 }
   0x8   :  { %48 = vmatpush.msra.mxu0 %v16_v5 }
   0xa   :  { %49 = vmatpush.msra.mxu0 %v15_v6 }
   0xb   :  { %61 = vmatmul.msk.f32.vlgmr.msra.gmra.mxu0 %vm26_vm1, %v14_v7 }
  0x75   :  { %v24_v8 = vpop.permute.xlu0 %23 }
  0x88   :  { %v51_v9 = vpop.f32.mrf.mxu0 }
  0x89   :  { %v52_v10 = vadd.f32 %v51_v9, %v24_v8 }
  0x8b   :  { %v54_v11 = vmax.f32 %v52_v10, 0.0 }
  0x8d   :  { %55 = vst [vmem:[%s112_s3] sm:$0xff] %v54_v11 }

// kernel: ae_forward.13
= control target key start
LH: loop header
LB: loop body
LE: loop exit
PB: predicated region body
PF: predicated region fallthrough
CT: control target
= control target key end

     0   :  { %v95_v3 = vmov 0   ;;  %vm39_vm0 = vcmask 588800   ;;  %s182_s1 = inlined_call_operand.vmem [shape: f32[72,256], index: 1, kind: input, shape index: {}]   ;;  %s183_s2 = inlined_call_operand.vmem [shape: f32[8,1], index: 2, kind: input, shape index: {}]   ;;  %s184_s0 = inlined_call_operand.vmem [shape: f32[8,72], index: 0, kind: input, shape index: {}]   ;;  %s185_s3 = inlined_call_operand.vmem [shape: f32[8,256], index: 3, kind: output, shape index: {}]  }
   0x1   :  { %v31_v0 = vld [vmem:[%s182_s1 + $0x80] sm:$0xff]  ;;  %v32_v1 = vld [vmem:[%s182_s1 + $0x88] sm:$0xff]  ;;  %v29_v2 = vld [vmem:[%s182_s1 + $0x70] sm:$0xff]  ;;  %94 = vset.pattern.permute.xlu0 %v95_v3 }
   0x2   :  { %50 = vmatpush.msra.mxu0 %v31_v0  ;;  %70 = vmatpush.msra.mxu1 %v32_v1  ;;  %v30_v4 = vld [vmem:[%s182_s1 + $0x78] sm:$0xff]  ;;  %v27_v5 = vld [vmem:[%s182_s1 + $0x60] sm:$0xff]  ;;  %v28_v6 = vld [vmem:[%s182_s1 + $0x68] sm:$0xff] }
   0x3   :  { %v25_v7 = vld [vmem:[%s182_s1 + $0x50] sm:$0xff]  ;;  %v26_v8 = vld [vmem:[%s182_s1 + $0x58] sm:$0xff]  ;;  %v23_v9 = vld [vmem:[%s182_s1 + $0x40] sm:$0xff] }
   0x4   :  { %51 = vmatpush.msra.mxu0 %v29_v2  ;;  %71 = vmatpush.msra.mxu1 %v30_v4  ;;  %v24_v10 = vld [vmem:[%s182_s1 + $0x48] sm:$0xff]  ;;  %v33_v11 = vld [vmem:[%s183_s2] sm:$0xff]  ;;  %v21_v12 = vld [vmem:[%s182_s1 + $0x30] sm:$0xff] }
   0x5   :  { %v22_v13 = vld [vmem:[%s182_s1 + $0x38] sm:$0xff]  ;;  %36 = vperm.xlu0 %94, %v33_v11   ;;  %v19_v14 = vld [vmem:[%s182_s1 + $0x20] sm:$0xff]  ;;  %v20_v15 = vld [vmem:[%s182_s1 + $0x28] sm:$0xff] }
   0x6   :  { %52 = vmatpush.msra.mxu0 %v27_v5  ;;  %72 = vmatpush.msra.mxu1 %v28_v6  ;;  %v17_v16 = vld [vmem:[%s182_s1 + $0x10] sm:$0xff]  ;;  %v18_v17 = vld [vmem:[%s182_s1 + $0x18] sm:$0xff]  ;;  %v15_v18 = vld [vmem:[%s182_s1] sm:$0xff] }
   0x7   :  { %v16_v19 = vld [vmem:[%s182_s1 + $0x8] sm:$0xff]  ;;  %v14_v20 = vld [vmem:[%s184_s0] sm:$0xff] }
   0x8   :  { %53 = vmatpush.msra.mxu0 %v25_v7  ;;  %73 = vmatpush.msra.mxu1 %v26_v8 }
   0xa   :  { %54 = vmatpush.msra.mxu0 %v23_v9  ;;  %74 = vmatpush.msra.mxu1 %v24_v10 }
   0xc   :  { %55 = vmatpush.msra.mxu0 %v21_v12  ;;  %75 = vmatpush.msra.mxu1 %v22_v13 }
   0xe   :  { %56 = vmatpush.msra.mxu0 %v19_v14  ;;  %76 = vmatpush.msra.mxu1 %v20_v15 }
  0x10   :  { %57 = vmatpush.msra.mxu0 %v17_v16  ;;  %77 = vmatpush.msra.mxu1 %v18_v17 }
  0x12   :  { %58 = vmatpush.msra.mxu0 %v15_v18  ;;  %78 = vmatpush.msra.mxu1 %v16_v19 }
  0x13   :  { %91 = vmatmul.msk.f32.vlgmr.msra.gmra.mxu0 %vm39_vm0, %v14_v20  ;;  %92 = vmatmul.msk.f32.vlgmr.msra.gmra.mxu1 %vm39_vm0, %v14_v20 }
  0x77   :  { %v37_v21 = vpop.permute.xlu0 %36 }
  0x90   :  { %v60_v22 = vpop.f32.mrf.mxu0  ;;  %v80_v23 = vpop.f32.mrf.mxu1 }
  0x91   :  { %v61_v24 = vadd.f32 %v60_v22, %v37_v21  ;;  %v81_v25 = vadd.f32 %v80_v23, %v37_v21 }
  0x93   :  { %v83_v26 = vmax.f32 %v61_v24, 0.0  ;;  %v84_v27 = vmax.f32 %v81_v25, 0.0 }
  0x95   :  { %85 = vst [vmem:[%s185_s3] sm:$0xff] %v83_v26 }
  0x96   :  { %86 = vst [vmem:[%s185_s3 + $0x8] sm:$0xff] %v84_v27 }

// kernel: ae_forward.14
= control target key start
LH: loop header
LB: loop body
LE: loop exit
PB: predicated region body
PF: predicated region fallthrough
CT: control target
= control target key end

     0   :  { %vm87_vm0 = vcmask 588800   ;;  %v275_v58 = vmov 0   ;;  %vm246_vm1 = vcmask 1042434   ;;  %vm244_vm2 = vcmask 1040384   ;;  %s510_s1 = inlined_call_operand.vmem [shape: f32[72,896], index: 1, kind: input, shape index: {}]   ;;  %s511_s2 = inlined_call_operand.<no memory space> [shape: f32[1,1], index: 2, kind: input, shape index: {}]   ;;  %s512_s0 = inlined_call_operand.vmem [shape: f32[1,72], index: 0, kind: input, shape index: {}]   ;;  %s513_s3 = inlined_call_operand.vmem [shape: f32[1,896], index: 3, kind: output, shape index: {}]  }
   0x1   :  { %v75_v0 = vld [vmem:[%s510_s1 + $0x1d0] sm:$0xff]  ;;  %v68_v1 = vld [vmem:[%s510_s1 + $0x198] sm:$0xff]  ;;  %v8_v2 = vstv %s511_s2  ;;  %v61_v3 = vld [vmem:[%s510_s1 + $0x160] sm:$0xff]  ;;  %274 = vset.pattern.permute.xlu0 %v275_v58  ;;  %vm250_vm3 = vcmask 1044484   ;;  %vm248_vm4 = vcmask 1041408   ;;  %vm252_vm5 = vcmask 1045508  }
   0x2   :  { %138 = vmatpush.msra.mxu2 %v75_v0  ;;  %v73_v4 = vld [vmem:[%s510_s1 + $0x1c0] sm:$0xff]  ;;  %v74_v5 = vld [vmem:[%s510_s1 + $0x1c8] sm:$0xff]  ;;  %9 = vst [vmem:[#allocation2] sm:$0x1] %v8_v2  ;;  %v76_v6 = vld [vmem:[%s510_s1 + $0x1d8] sm:$0xff]  ;;  %vm254_vm6 = vcmask 1043456  }
   0x3   :  { %98 = vmatpush.msra.mxu0 %v73_v4  ;;  %118 = vmatpush.msra.mxu1 %v74_v5  ;;  %v66_v7 = vld [vmem:[%s510_s1 + $0x188] sm:$0xff]  ;;  %v67_v8 = vld [vmem:[%s510_s1 + $0x190] sm:$0xff]  ;;  %v69_v9 = vld [vmem:[%s510_s1 + $0x1a0] sm:$0xff] }
   0x4   :  { %139 = vmatpush.msra.mxu2 %v68_v1  ;;  %158 = vmatpush.msra.mxu3 %v76_v6  ;;  %v59_v10 = vld [vmem:[%s510_s1 + $0x150] sm:$0xff]  ;;  %v54_v11 = vld [vmem:[%s510_s1 + $0x128] sm:$0xff]  ;;  %v60_v12 = vld [vmem:[%s510_s1 + $0x158] sm:$0xff] }
   0x5   :  { %99 = vmatpush.msra.mxu0 %v66_v7  ;;  %119 = vmatpush.msra.mxu1 %v67_v8  ;;  %v62_v13 = vld [vmem:[%s510_s1 + $0x168] sm:$0xff]  ;;  %v52_v14 = vld [vmem:[%s510_s1 + $0x118] sm:$0xff]  ;;  %v53_v15 = vld [vmem:[%s510_s1 + $0x120] sm:$0xff] }
   0x6   :  { %140 = vmatpush.msra.mxu2 %v61_v3  ;;  %159 = vmatpush.msra.mxu3 %v69_v9  ;;  %v47_v16 = vld [vmem:[%s510_s1 + $0xf0] sm:$0xff]  ;;  %v45_v18 = vld [vmem:[%s510_s1 + $0xe0] sm:$0xff]  ;;  %v46_v19 = vld [vmem:[%s510_s1 + $0xe8] sm:$0xff] }
   0x7   :  { %100 = vmatpush.msra.mxu0 %v59_v10  ;;  %120 = vmatpush.msra.mxu1 %v60_v12  ;;  %v55_v17 = vld [vmem:[%s510_s1 + $0x130] sm:$0xff]  ;;  %v40_v20 = vld [vmem:[%s510_s1 + $0xb8] sm:$0xff]  ;;  %v38_v22 = vld [vmem:[%s510_s1 + $0xa8] sm:$0xff] }
   0x8   :  { %141 = vmatpush.msra.mxu2 %v54_v11  ;;  %160 = vmatpush.msra.mxu3 %v62_v13  ;;  %v48_v21 = vld [vmem:[%s510_s1 + $0xf8] sm:$0xff]  ;;  %v39_v23 = vld [vmem:[%s510_s1 + $0xb0] sm:$0xff]  ;;  %v33_v24 = vld [vmem:[%s510_s1 + $0x80] sm:$0xff] }
   0x9   :  { %101 = vmatpush.msra.mxu0 %v52_v14  ;;  %121 = vmatpush.msra.mxu1 %v53_v15  ;;  %v41_v25 = vld [vmem:[%s510_s1 + $0xc0] sm:$0xff]  ;;  %v31_v26 = vld [vmem:[%s510_s1 + $0x70] sm:$0xff]  ;;  %v32_v27 = vld [vmem:[%s510_s1 + $0x78] sm:$0xff] }
   0xa   :  { %142 = vmatpush.msra.mxu2 %v47_v16  ;;  %161 = vmatpush.msra.mxu3 %v55_v17  ;;  %v26_v28 = vld [vmem:[%s510_s1 + $0x48] sm:$0xff]  ;;  %v24_v30 = vld [vmem:[%s510_s1 + $0x38] sm:$0xff]  ;;  %v25_v31 = vld [vmem:[%s510_s1 + $0x40] sm:$0xff] }
   0xb   :  { %102 = vmatpush.msra.mxu0 %v45_v18  ;;  %122 = vmatpush.msra.mxu1 %v46_v19  ;;  %v34_v29 = vld [vmem:[%s510_s1 + $0x88] sm:$0xff]  ;;  %v19_v32 = vld [vmem:[%s510_s1 + $0x10] sm:$0xff]  ;;  %v17_v35 = vld [vmem:[%s510_s1] sm:$0xff] }
   0xc   :  { %143 = vmatpush.msra.mxu2 %v40_v20  ;;  %162 = vmatpush.msra.mxu3 %v48_v21  ;;  %v27_v33 = vld [vmem:[%s510_s1 + $0x50] sm:$0xff]  ;;  %v18_v36 = vld [vmem:[%s510_s1 + $0x8] sm:$0xff]  ;;  %v20_v37 = vld [vmem:[%s510_s1 + $0x18] sm:$0xff] }
   0xd   :  { %103 = vmatpush.msra.mxu0 %v38_v22  ;;  %123 = vmatpush.msra.mxu1 %v39_v23  ;;  %v79_v34 = vld [vmem:[%s510_s1 + $0x1f0] sm:$0xff]  ;;  %v72_v38 = vld [vmem:[%s510_s1 + $0x1b8] sm:$0xff]  ;;  %v77_v39 = vld [vmem:[%s510_s1 + $0x1e0] sm:$0xff]  ;;  %v257_v22 = vlaneseq }
   0xe   :  { %144 = vmatpush.msra.mxu2 %v33_v24  ;;  %163 = vmatpush.msra.mxu3 %v41_v25  ;;  %v78_v40 = vld [vmem:[%s510_s1 + $0x1e8] sm:$0xff]  ;;  %v422_v41 = vld [vmem:[%s512_s0] sm:$0x1]  ;;  %v71_v44 = vld [vmem:[%s510_s1 + $0x1b0] sm:$0xff] }
   0xf   :  { %104 = vmatpush.msra.mxu0 %v31_v26  ;;  %124 = vmatpush.msra.mxu1 %v32_v27  ;;  %v65_v42 = vld [vmem:[%s510_s1 + $0x180] sm:$0xff]  ;;  %v70_v43 = vld [vmem:[%s510_s1 + $0x1a8] sm:$0xff]  ;;  %v63_v46 = vld [vmem:[%s510_s1 + $0x170] sm:$0xff]  ;;  %vm259_vm7 = vcmp.lt.s32.totalorder %v257_v22, 896 }
  0x10   :  { %145 = vmatpush.msra.mxu2 %v26_v28  ;;  %164 = vmatpush.msra.mxu3 %v34_v29  ;;  %v58_v45 = vld [vmem:[%s510_s1 + $0x148] sm:$0xff]  ;;  %v64_v47 = vld [vmem:[%s510_s1 + $0x178] sm:$0xff]  ;;  %v51_v48 = vld [vmem:[%s510_s1 + $0x110] sm:$0xff] }
  0x11   :  { %105 = vmatpush.msra.mxu0 %v24_v30  ;;  %125 = vmatpush.msra.mxu1 %v25_v31  ;;  %v56_v49 = vld [vmem:[%s510_s1 + $0x138] sm:$0xff]  ;;  %v57_v50 = vld [vmem:[%s510_s1 + $0x140] sm:$0xff]  ;;  %v50_v53 = vld [vmem:[%s510_s1 + $0x108] sm:$0xff] }
  0x12   :  { %146 = vmatpush.msra.mxu2 %v19_v32  ;;  %165 = vmatpush.msra.mxu3 %v27_v33  ;;  %v44_v51 = vld [vmem:[%s510_s1 + $0xd8] sm:$0xff]  ;;  %v49_v52 = vld [vmem:[%s510_s1 + $0x100] sm:$0xff]  ;;  %v42_v56 = vld [vmem:[%s510_s1 + $0xc8] sm:$0xff] }
  0x13   :  { %106 = vmatpush.msra.mxu0 %v17_v35  ;;  %126 = vmatpush.msra.mxu1 %v18_v36  ;;  %v37_v54 = vld [vmem:[%s510_s1 + $0xa0] sm:$0xff]  ;;  %v43_v57 = vld [vmem:[%s510_s1 + $0xd0] sm:$0xff]  ;;  %v30_v59 = vld [vmem:[%s510_s1 + $0x68] sm:$0xff] }
  0x14   :  { %218 = vmatpush.msrb.mxu2 %v79_v34  ;;  %166 = vmatpush.msra.mxu3 %v20_v37  ;;  %v80_v55 = vld [vmem:[#allocation2] sm:$0x1]  ;;  %v35_v60 = vld [vmem:[%s510_s1 + $0x90] sm:$0xff]  ;;  %v36_v61 = vld [vmem:[%s510_s1 + $0x98] sm:$0xff] }
  0x15   :  { %178 = vmatpush.msrb.mxu0 %v77_v39  ;;  %198 = vmatpush.msrb.mxu1 %v78_v40  ;;  %v23_v62 = vld [vmem:[%s510_s1 + $0x30] sm:$0xff]  ;;  %v28_v63 = vld [vmem:[%s510_s1 + $0x58] sm:$0xff]  ;;  %v29_v0 = vld [vmem:[%s510_s1 + $0x60] sm:$0xff] }
  0x16   :  { %219 = vmatpush.msrb.mxu2 %v72_v38  ;;  %269 = vmatmul.msk.f32.vlgmr.msra.gmra.mxu3 %vm87_vm0, %v422_v41  ;;  %v21_v1 = vld [vmem:[%s510_s1 + $0x20] sm:$0xff]  ;;  %v22_v2 = vld [vmem:[%s510_s1 + $0x28] sm:$0xff] }
  0x17   :  { %268 = vmatmul.msk.f32.vlgmr.msra.gmra.mxu2 %vm87_vm0, %v422_v41  ;;  %179 = vmatpush.msrb.mxu0 %v70_v43 }
  0x18   :  { %220 = vmatpush.msrb.mxu2 %v65_v42  ;;  %199 = vmatpush.msrb.mxu1 %v71_v44 }
  0x19   :  { %267 = vmatmul.msk.f32.vlgmr.msra.gmra.mxu1 %vm87_vm0, %v422_v41  ;;  %180 = vmatpush.msrb.mxu0 %v63_v46 }
  0x1a   :  { %221 = vmatpush.msrb.mxu2 %v58_v45  ;;  %200 = vmatpush.msrb.mxu1 %v64_v47 }
  0x1b   :  { %266 = vmatmul.msk.f32.vlgmr.msra.gmra.mxu0 %vm87_vm0, %v422_v41  ;;  %83 = vperm.xlu0 %274, %v80_v55  }
  0x1c   :  { %222 = vmatpush.msrb.mxu2 %v51_v48  ;;  %181 = vmatpush.msrb.mxu0 %v56_v49 }
  0x1d   :  { %201 = vmatpush.msrb.mxu1 %v57_v50 }
  0x1e   :  { %223 = vmatpush.msrb.mxu2 %v44_v51  ;;  %182 = vmatpush.msrb.mxu0 %v49_v52 }
  0x1f   :  { %202 = vmatpush.msrb.mxu1 %v50_v53 }
  0x20   :  { %224 = vmatpush.msrb.mxu2 %v37_v54  ;;  %183 = vmatpush.msrb.mxu0 %v42_v56 }
  0x21   :  { %203 = vmatpush.msrb.mxu1 %v43_v57 }
  0x22   :  { %225 = vmatpush.msrb.mxu2 %v30_v59  ;;  %184 = vmatpush.msrb.mxu0 %v35_v60 }
  0x23   :  { %204 = vmatpush.msrb.mxu1 %v36_v61 }
  0x24   :  { %226 = vmatpush.msrb.mxu2 %v23_v62  ;;  %185 = vmatpush.msrb.mxu0 %v28_v63 }
  0x25   :  { %272 = vmatmul.msk.f32.vlgmr.msrb.gmra.mxu2 %vm87_vm0, %v422_v41  ;;  %205 = vmatpush.msrb.mxu1 %v29_v0 }
  0x26   :  { %186 = vmatpush.msrb.mxu0 %v21_v1 }
  0x27   :  { %206 = vmatpush.msrb.mxu1 %v22_v2  ;;  %270 = vmatmul.msk.f32.vlgmr.msrb.gmra.mxu0 %vm87_vm0, %v422_v41 }
  0x28   :  { %271 = vmatmul.msk.f32.vlgmr.msrb.gmra.mxu1 %vm87_vm0, %v422_v41 }
  0x8d   :  { %v84_v3 = vpop.permute.xlu0 %83 }
  0x8e   :  { %v86_v5 = vperm.slane %v84_v3, 0 }
  0x96   :  { %v128_v6 = vpop.f32.mrf.mxu1 }
  0x97   :  { %v129_v9 = vadd.f32 %v128_v6, %v86_v5 }
  0x98   :  { %v108_v4 = vpop.f32.mrf.mxu0 }
  0x99   :  { %v168_v8 = vpop.f32.mrf.mxu3  ;;  %v238_v12 = vrot.slane %v129_v9, 7  ;;  %v109_v16 = vadd.f32 %v108_v4, %v86_v5 }
  0x9a   :  { %v148_v7 = vpop.f32.mrf.mxu2  ;;  %v169_v11 = vadd.f32 %v168_v8, %v86_v5 }
  0x9b   :  { %v149_v10 = vadd.f32 %v148_v7, %v86_v5  ;;  %v245_v26 = vsel %vm244_vm2, %v109_v16, %v238_v12 }
  0x9c   :  { %v240_v15 = vrot.slane %v169_v11, 5 }
  0x9d   :  { %v239_v14 = vrot.slane %v149_v10, 6 }
  0x9f   :  { %v247_v25 = vsel %vm246_vm1, %v239_v14, %v240_v15 }
  0xa0   :  { %v249_v29 = vsel %vm248_vm4, %v245_v26, %v247_v25 }
  0xa4   :  { %v188_v13 = vpop.f32.mrf.mxu0 }
  0xa5   :  { %v189_v17 = vadd.f32 %v188_v13, %v86_v5  ;;  %v208_v18 = vpop.f32.mrf.mxu1 }
  0xa6   :  { %v209_v19 = vadd.f32 %v208_v18, %v86_v5 }
  0xa7   :  { %v241_v20 = vrot.slane %v189_v17, 4 }
  0xa8   :  { %v228_v21 = vpop.f32.mrf.mxu2  ;;  %v242_v23 = vrot.slane %v209_v19, 3 }
  0xa9   :  { %v229_v24 = vadd.f32 %v228_v21, %v86_v5 }
  0xaa   :  { %v251_v27 = vsel %vm250_vm3, %v241_v20, %v242_v23 }
  0xab   :  { %v243_v28 = vrot.slane %v229_v24, 2 }
  0xad   :  { %v253_v30 = vsel %vm252_vm5, %v251_v27, %v243_v28 }
  0xae   :  { %v255_v31 = vsel %vm254_vm6, %v249_v29, %v253_v30 }
  0xaf   :  { %261 = vst.msk [vmem:[%s513_s3] sm:$0x7f] %vm259_vm7, %v255_v31 }

// kernel: ae_forward.15
= control target key start
LH: loop header
LB: loop body
LE: loop exit
PB: predicated region body
PF: predicated region fallthrough
CT: control target
= control target key end

     0   :  { %vm41_vm0 = vcmask 1042432   ;;  %vm25_vm1 = vcmask 154624   ;;  %vm93_vm2 = vcmask 1046528   ;;  %vm77_vm3 = vcmask 187392   ;;  %s384_s0 = inlined_call_operand.vmem [shape: f32[2,19,23], index: 0, kind: input, shape index: {}]   ;;  %s385_s1 = inlined_call_operand.vmem [shape: f32[36,19], index: 1, kind: input, shape index: {}]   ;;  %s386_s2 = inlined_call_operand.vmem [shape: f32[23,44], index: 2, kind: input, shape index: {}]   ;;  %s387_s3 = inlined_call_operand.vmem [shape: f32[2,36,44], index: 3, kind: output, shape index: {}]  }
   0x1   :  { %v246_v0 = vld [vmem:[%s384_s0 + $0x28] sm:$0x7]  ;;  %v245_v1 = vld [vmem:[%s384_s0 + $0x20] sm:$0xff]  ;;  %v24_v2 = vld [vmem:[%s384_s0 + $0x10] sm:$0x7]  ;;  %vm129_vm4 = vcmask 359424  }
   0x2   :  { %247 = vmatpush.msk.msra.mxu2 %vm41_vm0, %v246_v0  ;;  %v244_v3 = vld [vmem:[%s384_s0 + $0x18] sm:$0xff]  ;;  %232 = vmatpush.msk.msra.mxu0 %vm41_vm0, %v24_v2  ;;  %v23_v4 = vld [vmem:[%s384_s0 + $0x8] sm:$0xff]  ;;  %v14_v5 = vld [vmem:[%s385_s1] sm:$0xff]  ;;  %vm134_vm5 = vcmask 355328  }
   0x3   :  { %v22_v6 = vld [vmem:[%s384_s0] sm:$0xff]  ;;  %v21_v7 = vld [vmem:[%s386_s2 + $0x10] sm:$0x7f]  ;;  %v20_v8 = vld [vmem:[%s386_s2 + $0x8] sm:$0xff] }
   0x4   :  { %157 = vmatpush.msra.mxu2 %v245_v1  ;;  %59 = vmatpush.msra.mxu0 %v23_v4  ;;  %v15_v9 = vld [vmem:[%s385_s1 + $0x8] sm:$0xff]  ;;  %v16_v10 = vld [vmem:[%s385_s1 + $0x10] sm:$0xff]  ;;  %v17_v11 = vld [vmem:[%s385_s1 + $0x18] sm:$0xff] }
   0x5   :  { %253 = vmatpush.msk.msra.mxu3 %vm93_vm2, %v21_v7  ;;  %238 = vmatpush.msk.msra.mxu1 %vm93_vm2, %v21_v7  ;;  %v18_v12 = vld [vmem:[%s385_s1 + $0x20] sm:$0xf] }
   0x6   :  { %158 = vmatpush.msra.mxu2 %v244_v3  ;;  %60 = vmatpush.msra.mxu0 %v22_v6  ;;  %v19_v13 = vld [vmem:[%s386_s2] sm:$0xff] }
   0x7   :  { %248 = vmatmul.msk.f32.vlgmr.msra.gmra.mxu2 %vm25_vm1, %v14_v5  ;;  %233 = vmatmul.msk.f32.vlgmr.msra.gmra.mxu0 %vm25_vm1, %v14_v5 }
   0x8   :  { %204 = vmatpush.msra.mxu3 %v20_v8  ;;  %111 = vmatpush.msra.mxu1 %v20_v8 }
   0xa   :  { %205 = vmatpush.msra.mxu3 %v19_v13  ;;  %112 = vmatpush.msra.mxu1 %v19_v13 }
   0xf   :  { %249 = vmatmul.msk.f32.gmra.mxu2 %vm25_vm1, %v15_v9  ;;  %234 = vmatmul.msk.f32.gmra.mxu0 %vm25_vm1, %v15_v9 }
  0x17   :  { %250 = vmatmul.msk.f32.gmra.mxu2 %vm25_vm1, %v16_v10  ;;  %235 = vmatmul.msk.f32.gmra.mxu0 %vm25_vm1, %v16_v10 }
  0x1f   :  { %251 = vmatmul.msk.f32.gmra.mxu2 %vm25_vm1, %v17_v11  ;;  %236 = vmatmul.msk.f32.gmra.mxu0 %vm25_vm1, %v17_v11 }
  0x27   :  { %252 = vmatmul.msk.f32.gmra.mxu2 %vm25_vm1, %v18_v12  ;;  %237 = vmatmul.msk.f32.gmra.mxu0 %vm25_vm1, %v18_v12 }
  0x84   :  { %v62_v14 = vpop.f32.mrf.mxu0 }
  0x85   :  { %239 = vmatmul.msk.f32.vlgmr.msra.gmra.mxu1 %vm77_vm3, %v62_v14 }
  0x8a   :  { %v160_v15 = vpop.f32.mrf.mxu2 }
  0x8b   :  { %254 = vmatmul.msk.f32.vlgmr.msra.gmra.mxu3 %vm77_vm3, %v160_v15 }
  0x8c   :  { %v65_v16 = vpop.f32.mrf.mxu0 }
  0x8d   :  { %240 = vmatmul.msk.f32.gmra.mxu1 %vm77_vm3, %v65_v16 }
  0x92   :  { %v163_v17 = vpop.f32.mrf.mxu2 }
  0x93   :  { %255 = vmatmul.msk.f32.gmra.mxu3 %vm77_vm3, %v163_v17 }
  0x94   :  { %v68_v18 = vpop.f32.mrf.mxu0 }
  0x95   :  { %241 = vmatmul.msk.f32.gmra.mxu1 %vm77_vm3, %v68_v18 }
  0x9a   :  { %v166_v19 = vpop.f32.mrf.mxu2 }
  0x9b   :  { %256 = vmatmul.msk.f32.gmra.mxu3 %vm77_vm3, %v166_v19 }
  0x9c   :  { %v71_v20 = vpop.f32.mrf.mxu0 }
  0x9d   :  { %242 = vmatmul.msk.f32.gmra.mxu1 %vm77_vm3, %v71_v20 }
  0xa2   :  { %v169_v21 = vpop.f32.mrf.mxu2 }
  0xa3   :  { %257 = vmatmul.msk.f32.gmra.mxu3 %vm77_vm3, %v169_v21 }
  0xa4   :  { %v74_v22 = vpop.f32.mrf.mxu0 }
  0xa5   :  { %243 = vmatmul.msk.f32.gmra.mxu1 %vm77_vm3, %v74_v22 }
  0xaa   :  { %v172_v23 = vpop.f32.mrf.mxu2 }
  0xab   :  { %258 = vmatmul.msk.f32.gmra.mxu3 %vm77_vm3, %v172_v23 }
 0x102   :  { %v114_v24 = vpop.f32.mrf.mxu1 }
 0x103   :  { %130 = vst.msk [vmem:[%s387_s3] sm:$0xff] %vm129_vm4, %v114_v24 }
 0x10a   :  { %v117_v25 = vpop.f32.mrf.mxu1 }
 0x10b   :  { %131 = vst.msk [vmem:[%s387_s3 + $0x8] sm:$0xff] %vm129_vm4, %v117_v25 }
 0x10e   :  { %v207_v26 = vpop.f32.mrf.mxu3 }
 0x10f   :  { %259 = vst.msk [vmem:[%s387_s3 + $0x28] sm:$0xff] %vm129_vm4, %v207_v26 }
 0x112   :  { %v120_v27 = vpop.f32.mrf.mxu1 }
 0x113   :  { %132 = vst.msk [vmem:[%s387_s3 + $0x10] sm:$0xff] %vm129_vm4, %v120_v27 }
 0x116   :  { %v210_v28 = vpop.f32.mrf.mxu3 }
 0x117   :  { %260 = vst.msk [vmem:[%s387_s3 + $0x30] sm:$0xff] %vm129_vm4, %v210_v28 }
 0x11a   :  { %v123_v29 = vpop.f32.mrf.mxu1 }
 0x11b   :  { %133 = vst.msk [vmem:[%s387_s3 + $0x18] sm:$0xff] %vm129_vm4, %v123_v29 }
 0x11e   :  { %v213_v30 = vpop.f32.mrf.mxu3 }
 0x11f   :  { %261 = vst.msk [vmem:[%s387_s3 + $0x38] sm:$0xff] %vm129_vm4, %v213_v30 }
 0x122   :  { %v126_v31 = vpop.f32.mrf.mxu1 }
 0x123   :  { %135 = vst.msk [vmem:[%s387_s3 + $0x20] sm:$0xf] %vm134_vm5, %v126_v31 }
 0x126   :  { %v216_v32 = vpop.f32.mrf.mxu3 }
 0x127   :  { %262 = vst.msk [vmem:[%s387_s3 + $0x40] sm:$0xff] %vm129_vm4, %v216_v32 }
 0x12e   :  { %v219_v33 = vpop.f32.mrf.mxu3 }
 0x12f   :  { %263 = vst.msk [vmem:[%s387_s3 + $0x48] sm:$0xf] %vm134_vm5, %v219_v33 }

</bundles_post_ra>
